<compile_context>
chip_gen: v7x
topology: tpu7x:2x2x1
jax: 0.10.0
libtpu: 0.0.40
codegen_flags: <defaults>
</compile_context>

<pallas_src>
import jax
import jax.numpy as jnp
from jax.experimental import pallas as pl
from jax.experimental.pallas import tpu as pltpu


def _round_up(n, m):
    return (n + m - 1) // m * m


# ---------------------------------------------------------------------------
# Pallas kernel: full VAE forward for one row-tile of the batch
# ---------------------------------------------------------------------------
def vae_kernel(
    x_ref, eps_ref,
    w1_ref, b1_ref,        # (784, 400) bf16, (1, 400) f32
    wml_ref, bml_ref,      # fused fc21|fc22: (400, 40) bf16, (1, 40) f32
    w3_ref, b3_ref,        # (20, 400) bf16, (1, 400) f32
    w4_ref, b4_ref,        # (400, 784) bf16, (1, 784) f32
    recon_ref, mulv_ref,
):
    bf16 = jnp.bfloat16
    x = x_ref[...]                                     # (BM, 784) f32
    eps = eps_ref[...]                                 # (BM, 20)  f32
    zdim = eps.shape[1]

    # encode: h1 = relu(x @ W1 + b1)
    h1 = jnp.dot(x.astype(bf16), w1_ref[...], preferred_element_type=jnp.float32)
    h1 = jnp.maximum(h1 + b1_ref[...], 0.0)            # (BM, 400) f32

    # fused fc21 / fc22: one MXU pass producing [mu | logvar]
    mulv = jnp.dot(h1.astype(bf16), wml_ref[...], preferred_element_type=jnp.float32)
    mulv = mulv + bml_ref[...]                          # (BM, 40) f32
    mu = mulv[:, :zdim]
    logvar = mulv[:, zdim:]

    # reparametrize: z = eps * exp(0.5 * logvar) + mu
    z = eps * jnp.exp(0.5 * logvar) + mu                # (BM, 20) f32

    # decode: h3 = relu(z @ W3 + b3)
    h3 = jnp.dot(z.astype(bf16), w3_ref[...], preferred_element_type=jnp.float32)
    h3 = jnp.maximum(h3 + b3_ref[...], 0.0)             # (BM, 400) f32

    # recon = sigmoid(h3 @ W4 + b4); exp + approx reciprocal -> EUP slot
    logits = jnp.dot(h3.astype(bf16), w4_ref[...], preferred_element_type=jnp.float32)
    logits = logits + b4_ref[...]                        # (BM, 784) f32
    recon_ref[...] = pl.reciprocal(1.0 + jnp.exp(-logits), approx=True)
    mulv_ref[...] = mulv


# ---------------------------------------------------------------------------
# Wrapper: packs / casts params, builds the batch-tiled grid
# ---------------------------------------------------------------------------
def vae_forward(x, eps, params, *, block_b=256):
    """params = (w1, b1, w21, b21, w22, b22, w3, b3, w4, b4), f32, weights (in, out).

    Returns (recon, mu, logvar) matching the PyTorch VAE.forward semantics
    (with the reparam noise `eps` supplied explicitly).
    """
    w1, b1, w21, b21, w22, b22, w3, b3, w4, b4 = params

    # Fuse the two encoder heads into one matmul: [mu | logvar]
    w_ml = jnp.concatenate([w21, w22], axis=1)          # (400, 40)
    b_ml = jnp.concatenate([b21, b22], axis=1)          # (1, 40)

    bf16 = jnp.bfloat16
    kernel_params = (
        w1.astype(bf16), b1,
        w_ml.astype(bf16), b_ml,
        w3.astype(bf16), b3,
        w4.astype(bf16), b4,
    )

    B, d_in = x.shape                                    # (B, 784)
    zdim = eps.shape[1]                                  # 20

    # Row tile: multiple of 8 (f32 sublane), capped at block_b; pad B to a
    # whole number of tiles and slice the padding off afterwards.
    bm = min(block_b, _round_up(B, 8))
    b_pad = _round_up(B, bm)
    if b_pad != B:
        x = jnp.pad(x, ((0, b_pad - B), (0, 0)))
        eps = jnp.pad(eps, ((0, b_pad - B), (0, 0)))

    grid = (b_pad // bm,)

    def row_spec(cols):
        return pl.BlockSpec((bm, cols), lambda i: (i, 0))

    def resident_spec(arr):
        # Weights / biases: same block every step -> stay resident in VMEM.
        return pl.BlockSpec(arr.shape, lambda i: (0, 0))

    in_specs = [row_spec(d_in), row_spec(zdim)] + [resident_spec(p) for p in kernel_params]
    out_specs = (row_spec(d_in), row_spec(2 * zdim))
    out_shape = (
        jax.ShapeDtypeStruct((b_pad, d_in), jnp.float32),     # reconstruction
        jax.ShapeDtypeStruct((b_pad, 2 * zdim), jnp.float32),  # [mu | logvar]
    )

    recon, mu_logvar = pl.pallas_call(
        vae_kernel,
        grid=grid,
        in_specs=in_specs,
        out_specs=out_specs,
        out_shape=out_shape,
        compiler_params=pltpu.CompilerParams(
            dimension_semantics=("parallel",),
        ),
    )(x, eps, *kernel_params)

    recon = recon[:B]
    mu = mu_logvar[:B, :zdim]
    logvar = mu_logvar[:B, zdim:]
    return recon, mu, logvar


# ---------------------------------------------------------------------------
# Deterministic parameter init (PyTorch Linear default: U(-1/sqrt(fan_in), +))
# ---------------------------------------------------------------------------
def init_linear(key, fan_in, fan_out):
    kw, kb = jax.random.split(key)
    bound = 1.0 / jnp.sqrt(fan_in)
    # stored as (in, out) == PyTorch weight (out, in) transposed
    w = jax.random.uniform(kw, (fan_in, fan_out), jnp.float32, -bound, bound)
    b = jax.random.uniform(kb, (1, fan_out), jnp.float32, -bound, bound)
    return w, b


def init_vae_params(key):
    k1, k21, k22, k3, k4 = jax.random.split(key, 5)
    w1, b1 = init_linear(k1, 784, 400)
    w21, b21 = init_linear(k21, 400, 20)
    w22, b22 = init_linear(k22, 400, 20)
    w3, b3 = init_linear(k3, 20, 400)
    w4, b4 = init_linear(k4, 400, 784)
    return (w1, b1, w21, b21, w22, b22, w3, b3, w4, b4)


# ---------------------------------------------------------------------------
# Pure-JAX references
# ---------------------------------------------------------------------------
def vae_ref_f32(x, eps, params):
    """Exact f32 reference of the original PyTorch forward."""
    w1, b1, w21, b21, w22, b22, w3, b3, w4, b4 = params
    h1 = jnp.maximum(x @ w1 + b1, 0.0)
    mu = h1 @ w21 + b21
    logvar = h1 @ w22 + b22
    z = eps * jnp.exp(0.5 * logvar) + mu
    h3 = jnp.maximum(z @ w3 + b3, 0.0)
    recon = jax.nn.sigmoid(h3 @ w4 + b4)
    return recon, mu, logvar


def vae_ref_bf16(x, eps, params):
    """Precision-matched reference: bf16 dot inputs, f32 accumulation."""
    w1, b1, w21, b21, w22, b22, w3, b3, w4, b4 = params
    bf = lambda a: a.astype(jnp.bfloat16)
    dot = lambda a, w: jnp.dot(bf(a), bf(w), preferred_element_type=jnp.float32)
    h1 = jnp.maximum(dot(x, w1) + b1, 0.0)
    mu = dot(h1, w21) + b21
    logvar = dot(h1, w22) + b22
    z = eps * jnp.exp(0.5 * logvar) + mu
    h3 = jnp.maximum(dot(z, w3) + b3, 0.0)
    recon = jax.nn.sigmoid(dot(h3, w4) + b4)
    return recon, mu, logvar


if __name__ == "__main__":
    key = jax.random.PRNGKey(0)
    kx, keps, kp = jax.random.split(key, 3)

    B = 20
    x = jax.random.uniform(kx, (B, 784), jnp.float32)       # fake MNIST batch
    eps = jax.random.normal(keps, (B, 20), jnp.float32)     # reparam noise
    params = init_vae_params(kp)

    # Small block_b so the test exercises the multi-step grid + batch padding.
    recon, mu, logvar = jax.block_until_ready(vae_forward(x, eps, params, block_b=8))

    assert recon.shape == (B, 784) and mu.shape == (B, 20) and logvar.shape == (B, 20)

    # Tight check against the precision-matched (bf16 matmul) reference.
    r_m, mu_m, lv_m = vae_ref_bf16(x, eps, params)
    assert jnp.allclose(mu, mu_m, atol=2e-3), float(jnp.max(jnp.abs(mu - mu_m)))
    assert jnp.allclose(logvar, lv_m, atol=2e-3), float(jnp.max(jnp.abs(logvar - lv_m)))
    assert jnp.allclose(recon, r_m, atol=5e-3), float(jnp.max(jnp.abs(recon - r_m)))

    # Loose sanity check against the exact f32 reference (bf16 weights + approx sigmoid).
    r_f, mu_f, lv_f = vae_ref_f32(x, eps, params)
    assert jnp.allclose(mu, mu_f, atol=3e-2)
    assert jnp.allclose(logvar, lv_f, atol=3e-2)
    assert jnp.allclose(recon, r_f, atol=3e-2)

    print("KERNEL_OK")
</pallas_src>

<mosaic_0001>
module attributes {stable_mosaic.version = 11 : i64} {
  func.func @vae_kernel(%arg0: i32, %arg1: memref<8x784xf32, #tpu.memory_space<vmem>>, %arg2: memref<8x20xf32, #tpu.memory_space<vmem>>, %arg3: memref<784x400xbf16, #tpu.memory_space<vmem>>, %arg4: memref<1x400xf32, #tpu.memory_space<vmem>>, %arg5: memref<400x40xbf16, #tpu.memory_space<vmem>>, %arg6: memref<1x40xf32, #tpu.memory_space<vmem>>, %arg7: memref<20x400xbf16, #tpu.memory_space<vmem>>, %arg8: memref<1x400xf32, #tpu.memory_space<vmem>>, %arg9: memref<400x784xbf16, #tpu.memory_space<vmem>>, %arg10: memref<1x784xf32, #tpu.memory_space<vmem>>, %arg11: memref<8x784xf32, #tpu.memory_space<vmem>>, %arg12: memref<8x40xf32, #tpu.memory_space<vmem>>) attributes {dimension_semantics = [#tpu.dimension_semantics<parallel>], iteration_bounds = array<i64: 3>, scalar_prefetch = 0 : i64, scratch_operands = 0 : i64, tpu.core_type = #tpu.core_type<tc>, window_params = [{transform_indices = @transform_0, window_bounds = array<i64: 8, 784>}, {transform_indices = @transform_1, window_bounds = array<i64: 8, 20>}, {pipeline_mode = #tpu.pipeline_mode<synchronous>, transform_indices = @transform_2, window_bounds = array<i64: 784, 400>}, {pipeline_mode = #tpu.pipeline_mode<synchronous>, transform_indices = @transform_3, window_bounds = array<i64: 1, 400>}, {pipeline_mode = #tpu.pipeline_mode<synchronous>, transform_indices = @transform_4, window_bounds = array<i64: 400, 40>}, {pipeline_mode = #tpu.pipeline_mode<synchronous>, transform_indices = @transform_5, window_bounds = array<i64: 1, 40>}, {pipeline_mode = #tpu.pipeline_mode<synchronous>, transform_indices = @transform_6, window_bounds = array<i64: 20, 400>}, {pipeline_mode = #tpu.pipeline_mode<synchronous>, transform_indices = @transform_7, window_bounds = array<i64: 1, 400>}, {pipeline_mode = #tpu.pipeline_mode<synchronous>, transform_indices = @transform_8, window_bounds = array<i64: 400, 784>}, {pipeline_mode = #tpu.pipeline_mode<synchronous>, transform_indices = @transform_9, window_bounds = array<i64: 1, 784>}, {transform_indices = @transform_10, window_bounds = array<i64: 8, 784>}, {transform_indices = @transform_11, window_bounds = array<i64: 8, 40>}]} {
    %c0 = arith.constant 0 : index
    %c0_0 = arith.constant 0 : index
    %0 = vector.load %arg1[%c0, %c0_0] : memref<8x784xf32, #tpu.memory_space<vmem>>, vector<8x784xf32>
    %c0_1 = arith.constant 0 : index
    %c0_2 = arith.constant 0 : index
    %1 = vector.load %arg2[%c0_1, %c0_2] : memref<8x20xf32, #tpu.memory_space<vmem>>, vector<8x20xf32>
    %2 = arith.truncf %0 : vector<8x784xf32> to vector<8x784xbf16>
    %c0_3 = arith.constant 0 : index
    %c0_4 = arith.constant 0 : index
    %3 = vector.load %arg3[%c0_3, %c0_4] : memref<784x400xbf16, #tpu.memory_space<vmem>>, vector<784x400xbf16>
    %cst = arith.constant dense<0.000000e+00> : vector<8x400xf32>
    %4 = tpu.matmul %2, %3, %cst {dimension_numbers = #tpu.dot_dimension_numbers<[1], [0], [0], [1], [0, 0, 1, 1], [], []>} : vector<8x784xbf16>, vector<784x400xbf16>, vector<8x400xf32> -> vector<8x400xf32>
    %c0_5 = arith.constant 0 : index
    %c0_6 = arith.constant 0 : index
    %5 = vector.load %arg4[%c0_5, %c0_6] : memref<1x400xf32, #tpu.memory_space<vmem>>, vector<1x400xf32>
    %6 = vector.broadcast %5 : vector<1x400xf32> to vector<8x400xf32>
    %7 = arith.addf %4, %6 : vector<8x400xf32>
    %cst_7 = arith.constant 0.000000e+00 : f32
    %8 = vector.broadcast %cst_7 : f32 to vector<8x400xf32>
    %9 = arith.maximumf %7, %8 : vector<8x400xf32>
    %10 = arith.truncf %9 : vector<8x400xf32> to vector<8x400xbf16>
    %c0_8 = arith.constant 0 : index
    %c0_9 = arith.constant 0 : index
    %11 = vector.load %arg5[%c0_8, %c0_9] : memref<400x40xbf16, #tpu.memory_space<vmem>>, vector<400x40xbf16>
    %cst_10 = arith.constant dense<0.000000e+00> : vector<8x40xf32>
    %12 = tpu.matmul %10, %11, %cst_10 {dimension_numbers = #tpu.dot_dimension_numbers<[1], [0], [0], [1], [0, 0, 1, 1], [], []>} : vector<8x400xbf16>, vector<400x40xbf16>, vector<8x40xf32> -> vector<8x40xf32>
    %c0_11 = arith.constant 0 : index
    %c0_12 = arith.constant 0 : index
    %13 = vector.load %arg6[%c0_11, %c0_12] : memref<1x40xf32, #tpu.memory_space<vmem>>, vector<1x40xf32>
    %14 = vector.broadcast %13 : vector<1x40xf32> to vector<8x40xf32>
    %15 = arith.addf %12, %14 : vector<8x40xf32>
    %16 = vector.extract_strided_slice %15 {offsets = [0, 0], sizes = [8, 20], strides = [1, 1]} : vector<8x40xf32> to vector<8x20xf32>
    %17 = vector.extract_strided_slice %15 {offsets = [0, 20], sizes = [8, 20], strides = [1, 1]} : vector<8x40xf32> to vector<8x20xf32>
    %cst_13 = arith.constant 5.000000e-01 : f32
    %18 = vector.broadcast %cst_13 : f32 to vector<8x20xf32>
    %19 = arith.mulf %18, %17 : vector<8x20xf32>
    %20 = math.exp %19 : vector<8x20xf32>
    %21 = arith.mulf %1, %20 : vector<8x20xf32>
    %22 = arith.addf %21, %16 : vector<8x20xf32>
    %23 = arith.truncf %22 : vector<8x20xf32> to vector<8x20xbf16>
    %c0_14 = arith.constant 0 : index
    %c0_15 = arith.constant 0 : index
    %24 = vector.load %arg7[%c0_14, %c0_15] : memref<20x400xbf16, #tpu.memory_space<vmem>>, vector<20x400xbf16>
    %cst_16 = arith.constant dense<0.000000e+00> : vector<8x400xf32>
    %25 = tpu.matmul %23, %24, %cst_16 {dimension_numbers = #tpu.dot_dimension_numbers<[1], [0], [0], [1], [0, 0, 1, 1], [], []>} : vector<8x20xbf16>, vector<20x400xbf16>, vector<8x400xf32> -> vector<8x400xf32>
    %c0_17 = arith.constant 0 : index
    %c0_18 = arith.constant 0 : index
    %26 = vector.load %arg8[%c0_17, %c0_18] : memref<1x400xf32, #tpu.memory_space<vmem>>, vector<1x400xf32>
    %27 = vector.broadcast %26 : vector<1x400xf32> to vector<8x400xf32>
    %28 = arith.addf %25, %27 : vector<8x400xf32>
    %cst_19 = arith.constant 0.000000e+00 : f32
    %29 = vector.broadcast %cst_19 : f32 to vector<8x400xf32>
    %30 = arith.maximumf %28, %29 : vector<8x400xf32>
    %31 = arith.truncf %30 : vector<8x400xf32> to vector<8x400xbf16>
    %c0_20 = arith.constant 0 : index
    %c0_21 = arith.constant 0 : index
    %32 = vector.load %arg9[%c0_20, %c0_21] : memref<400x784xbf16, #tpu.memory_space<vmem>>, vector<400x784xbf16>
    %cst_22 = arith.constant dense<0.000000e+00> : vector<8x784xf32>
    %33 = tpu.matmul %31, %32, %cst_22 {dimension_numbers = #tpu.dot_dimension_numbers<[1], [0], [0], [1], [0, 0, 1, 1], [], []>} : vector<8x400xbf16>, vector<400x784xbf16>, vector<8x784xf32> -> vector<8x784xf32>
    %c0_23 = arith.constant 0 : index
    %c0_24 = arith.constant 0 : index
    %34 = vector.load %arg10[%c0_23, %c0_24] : memref<1x784xf32, #tpu.memory_space<vmem>>, vector<1x784xf32>
    %35 = vector.broadcast %34 : vector<1x784xf32> to vector<8x784xf32>
    %36 = arith.addf %33, %35 : vector<8x784xf32>
    %cst_25 = arith.constant 0.000000e+00 : f32
    %37 = vector.broadcast %cst_25 : f32 to vector<8x784xf32>
    %38 = arith.subf %37, %36 : vector<8x784xf32>
    %39 = math.exp %38 : vector<8x784xf32>
    %cst_26 = arith.constant 1.000000e+00 : f32
    %40 = vector.broadcast %cst_26 : f32 to vector<8x784xf32>
    %41 = arith.addf %40, %39 : vector<8x784xf32>
    %42 = tpu.reciprocal %41 {approx = true} : vector<8x784xf32> -> vector<8x784xf32>
    %c0_27 = arith.constant 0 : index
    %c0_28 = arith.constant 0 : index
    %43 = vector.load %arg11[%c0_27, %c0_28] : memref<8x784xf32, #tpu.memory_space<vmem>>, vector<8x784xf32>
    tpu.vector_store %arg11[%c0_27, %c0_28], %42 {strides = array<i32>} : memref<8x784xf32, #tpu.memory_space<vmem>>, vector<8x784xf32>,
    %c0_29 = arith.constant 0 : index
    %c0_30 = arith.constant 0 : index
    %44 = vector.load %arg12[%c0_29, %c0_30] : memref<8x40xf32, #tpu.memory_space<vmem>>, vector<8x40xf32>
    tpu.vector_store %arg12[%c0_29, %c0_30], %15 {strides = array<i32>} : memref<8x40xf32, #tpu.memory_space<vmem>>, vector<8x40xf32>,
    return
  }
  func.func @transform_0(%arg0: i32) -> (i32, i32) {
    %c0_i32 = arith.constant 0 : i32
    %c0_i32_0 = arith.constant 0 : i32
    return %arg0, %c0_i32 : i32, i32
  }
  func.func @transform_1(%arg0: i32) -> (i32, i32) {
    %c0_i32 = arith.constant 0 : i32
    %c0_i32_0 = arith.constant 0 : i32
    return %arg0, %c0_i32 : i32, i32
  }
  func.func @transform_2(%arg0: i32) -> (i32, i32) {
    %c0_i32 = arith.constant 0 : i32
    %c0_i32_0 = arith.constant 0 : i32
    %c0_i32_1 = arith.constant 0 : i32
    return %c0_i32, %c0_i32_0 : i32, i32
  }
  func.func @transform_3(%arg0: i32) -> (i32, i32) {
    %c0_i32 = arith.constant 0 : i32
    %c0_i32_0 = arith.constant 0 : i32
    %c0_i32_1 = arith.constant 0 : i32
    return %c0_i32, %c0_i32_0 : i32, i32
  }
  func.func @transform_4(%arg0: i32) -> (i32, i32) {
    %c0_i32 = arith.constant 0 : i32
    %c0_i32_0 = arith.constant 0 : i32
    %c0_i32_1 = arith.constant 0 : i32
    return %c0_i32, %c0_i32_0 : i32, i32
  }
  func.func @transform_5(%arg0: i32) -> (i32, i32) {
    %c0_i32 = arith.constant 0 : i32
    %c0_i32_0 = arith.constant 0 : i32
    %c0_i32_1 = arith.constant 0 : i32
    return %c0_i32, %c0_i32_0 : i32, i32
  }
  func.func @transform_6(%arg0: i32) -> (i32, i32) {
    %c0_i32 = arith.constant 0 : i32
    %c0_i32_0 = arith.constant 0 : i32
    %c0_i32_1 = arith.constant 0 : i32
    return %c0_i32, %c0_i32_0 : i32, i32
  }
  func.func @transform_7(%arg0: i32) -> (i32, i32) {
    %c0_i32 = arith.constant 0 : i32
    %c0_i32_0 = arith.constant 0 : i32
    %c0_i32_1 = arith.constant 0 : i32
    return %c0_i32, %c0_i32_0 : i32, i32
  }
  func.func @transform_8(%arg0: i32) -> (i32, i32) {
    %c0_i32 = arith.constant 0 : i32
    %c0_i32_0 = arith.constant 0 : i32
    %c0_i32_1 = arith.constant 0 : i32
    return %c0_i32, %c0_i32_0 : i32, i32
  }
  func.func @transform_9(%arg0: i32) -> (i32, i32) {
    %c0_i32 = arith.constant 0 : i32
    %c0_i32_0 = arith.constant 0 : i32
    %c0_i32_1 = arith.constant 0 : i32
    return %c0_i32, %c0_i32_0 : i32, i32
  }
  func.func @transform_10(%arg0: i32) -> (i32, i32) {
    %c0_i32 = arith.constant 0 : i32
    %c0_i32_0 = arith.constant 0 : i32
    return %arg0, %c0_i32 : i32, i32
  }
  func.func @transform_11(%arg0: i32) -> (i32, i32) {
    %c0_i32 = arith.constant 0 : i32
    %c0_i32_0 = arith.constant 0 : i32
    return %arg0, %c0_i32 : i32, i32
  }
}

</mosaic_0001>

<bundles_post_ra>
// kernel: tpu_custom_call.1
= control target key start
LH: loop header
LB: loop body
LE: loop exit
PB: predicated region body
PF: predicated region fallthrough
CT: control target
= control target key end

     0   :  { %s6909_s0 = inlined_call_operand.vmem [shape: f32[24,784], index: 0, kind: input, shape index: {}]   ;;  %s6910_s1 = inlined_call_operand.vmem [shape: f32[24,20], index: 1, kind: input, shape index: {}]   ;;  %s6911_s2 = inlined_call_operand.vmem [shape: bf16[784,400], index: 2, kind: input, shape index: {}]   ;;  %s6912_s3 = inlined_call_operand.vmem [shape: f32[1,400], index: 3, kind: input, shape index: {}]   ;;  %s6913_s4 = inlined_call_operand.vmem [shape: bf16[400,40], index: 4, kind: input, shape index: {}]   ;;  %s6914_s5 = inlined_call_operand.vmem [shape: f32[1,40], index: 5, kind: input, shape index: {}]   ;;  %s6915_s6 = inlined_call_operand.vmem [shape: bf16[20,400], index: 6, kind: input, shape index: {}]   ;;  %s6916_s7 = inlined_call_operand.vmem [shape: f32[1,400], index: 7, kind: input, shape index: {}]   ;;  %s6917_s8 = inlined_call_operand.vmem [shape: bf16[400,784], index: 8, kind: input, shape index: {}]   ;;  %s6918_s9 = inlined_call_operand.vmem [shape: f32[1,784], index: 9, kind: input, shape index: {}]   ;;  %s6919_s10 = inlined_call_operand.hbm [shape: f32[24,784], index: 10, kind: output, shape index: {0}]   ;;  %s6920_s11 = inlined_call_operand.hbm [shape: f32[24,40], index: 11, kind: output, shape index: {1}]  }
   0x1   :  { %6922 = sst [smem:[#allocation10_spill]] %s6909_s0 }
   0x2   :  { %17 = vsyncpa [#allocation3], 0 }
   0x3   :  { %19 = vsyncpa [#allocation3 + $0x1], 0 }
   0x4   :  { %20 = vsyncpa [#allocation5], 0 }
   0x5   :  { %22 = vsyncpa [#allocation5 + $0x1], 0  ;;  %s5412_s17 = smov 0   ;;  %s5414_s18 = smov 0  }
   0x6   :  { %s5416_s19 = smov 0   ;;  %s5418_s20 = smov 0  }
   0x7 LB: > { %6923 = sst [smem:[#allocation8_spill]] %s5342_s19  ;;  %s5433_s21 = sadd.s32 4294967295, %s5346_s20   ;;  %s5346_s20 = sphi %s5418_s20, %s6932_s20   ;;  %s5342_s19 = sphi %s5416_s19, %s6929_s19   ;;  %s5338_s18 = sphi %s5414_s18, %s6931_s18   ;;  %s5334_s17 = sphi %s5412_s17, %s6930_s17  }
   0x8   : > { %s4078_s22 = sadd.s32 4294967294, %s5346_s20   ;;  %s5437_s23 = sadd.s32 1, %s5346_s20  }
   0x9   : > { %s255_s24 = sadd.s32 1, %s5342_s19  ;;  %s252_s25 = ssub.s32 %s5346_s20, %s5437_s23 }
   0xa   : > { %p265_p0 = scmp.ne.s32.totalorder %s5342_s19, %s5338_s18  ;;  %p253_p1 = scmp.eq.s32.totalorder %s252_s25, 0 }
   0xb   : > { %p266_p2 = scmp.eq.s32.totalorder %s5433_s21, 2  ;;  %p271_p3 = scmp.ne.s32.totalorder %s5338_s18, %s5334_s17 }
   0xc   : > { %p272_p4 = scmp.eq.s32.totalorder %s4078_s22, 2  ;;  %p4081_p7 = scmp.ge.s32.totalorder %s5346_s20, 1 }
   0xd   : > { %s5448_s26 = scalar_select %p253_p1, %s5342_s19, %s255_s24  }
   0xe   : > { %p5450_p5 = por %p266_p2, %p265_p0  ;;  %p5454_p6 = por %p272_p4, %p271_p3 }
   0xf   : > { %6924 = sst [smem:[#allocation9_spill]] %s5448_s26  ;;  %p355_p8 = scmp.lt.s32.totalorder %s5346_s20, 4 }
  0x11   : > { %p356_p9 = pnand %p4081_p7, %p355_p8 }
  0x12   : > { %v4643_v0 = vld [vmem:[%s6911_s2 + $0x4] ss:$16 sps:$4 sm:$0xff] (!%p356_p9)   ;;  %p404_p10 = scmp.lt.s32.totalorder (!%p356_p9), %s5433_s21, 2  ;;  %v4645_v1 = vld [vmem:[%s6911_s2] ss:$16 sps:$4 sm:$0xff] (!%p356_p9)   ;;  %v5348_v2 = vmov (!%p356_p9), 0  }
  0x13   : > { %359 = sbr.rel (%p356_p9) target bundleno = 1421 (0x58d), region = 60  ;;  %1786 = vmatprep.mubr.bf16.mxu1 (!%p356_p9), %v5348_v2  ;;  %1631 = vmatprep.subr.bf16.mxu0 (!%p356_p9), %v4643_v0  ;;  %v4646_v3 = vld [vmem:[%s6911_s2 + $0x604] ss:$16 sps:$4 sm:$0xff] (!%p356_p9)   ;;  %v4648_v4 = vld [vmem:[%s6911_s2 + $0x600] ss:$16 sps:$4 sm:$0xff] (!%p356_p9)   ;;  %s6927_s0 = sld [smem:[#allocation10_spill]] (!%p356_p9) }
  0x14   : > { %1632 = vmatpush1.bf16.msra.mxu0 (!%p356_p9), %v4645_v1  ;;  %v4649_v5 = vld [vmem:[%s6911_s2 + $0x24] ss:$16 sps:$4 sm:$0xff] (!%p356_p9)   ;;  %v4651_v6 = vld [vmem:[%s6911_s2 + $0x20] ss:$16 sps:$4 sm:$0xff] (!%p356_p9)   ;;  %1754 = vmatprep.subr.bf16.mxu1 (!%p356_p9), %v4646_v3  ;;  %v4654_v7 = vld [vmem:[%s6911_s2 + $0xc] ss:$16 sps:$4 sm:$0xff] (!%p356_p9)  }
  0x15   : > { %1755 = vmatpush1.bf16.msra.mxu1 (!%p356_p9), %v4648_v4  ;;  %1633 = vmatprep.subr.bf16.mxu0 (!%p356_p9), %v4649_v5  ;;  %v4652_v8 = vld [vmem:[%s6911_s2 + $0x8] ss:$16 sps:$4 sm:$0xff] (!%p356_p9)   ;;  %v4655_v9 = vld [vmem:[%s6911_s2 + $0x44] ss:$16 sps:$4 sm:$0xff] (!%p356_p9)   ;;  %vm1627_vm0 = vcmask (!%p356_p9), 130048   ;;  %s6187_s26 = sand.u32 (!%p356_p9), 1, %s5338_s18  }
  0x16   : > { %1795 = vmatprep.subr.bf16.mxu1 (!%p356_p9), %v4654_v7  ;;  %v4657_v11 = vld [vmem:[%s6911_s2 + $0x40] ss:$16 sps:$4 sm:$0xff] (!%p356_p9)   ;;  %v4660_v13 = vld [vmem:[%s6911_s2 + $0x2c] ss:$16 sps:$4 sm:$0xff] (!%p356_p9)   ;;  %v4661_v14 = vld [vmem:[%s6911_s2 + $0x64] ss:$16 sps:$4 sm:$0xff] (!%p356_p9)  }
  0x17   : > { %v4658_v15 = vld [vmem:[%s6911_s2 + $0x28] ss:$16 sps:$4 sm:$0xff] (!%p356_p9)   ;;  %v4663_v16 = vld [vmem:[%s6911_s2 + $0x60] ss:$16 sps:$4 sm:$0xff] (!%p356_p9)   ;;  %v4666_v17 = vld [vmem:[%s6911_s2 + $0x4c] ss:$16 sps:$4 sm:$0xff] (!%p356_p9)  }
  0x18   : > { %1634 = vmatpush1.bf16.msra.mxu0 (!%p356_p9), %v4651_v6  ;;  %v4667_v18 = vld [vmem:[%s6911_s2 + $0x84] ss:$16 sps:$4 sm:$0xff] (!%p356_p9)   ;;  %v4664_v19 = vld [vmem:[%s6911_s2 + $0x48] ss:$16 sps:$4 sm:$0xff] (!%p356_p9)   ;;  %v4669_v20 = vld [vmem:[%s6911_s2 + $0x80] ss:$16 sps:$4 sm:$0xff] (!%p356_p9)  }
  0x19   : > { %1635 = vmatprep.subr.bf16.mxu0 (!%p356_p9), %v4655_v9  ;;  %v4672_v21 = vld [vmem:[%s6911_s2 + $0x6c] ss:$16 sps:$4 sm:$0xff] (!%p356_p9)   ;;  %v4673_v22 = vld [vmem:[%s6911_s2 + $0xa4] ss:$16 sps:$4 sm:$0xff] (!%p356_p9)   ;;  %v4670_v23 = vld [vmem:[%s6911_s2 + $0x68] ss:$16 sps:$4 sm:$0xff] (!%p356_p9)  }
  0x1a   : > { %s5475_s24 = scalar_select %p404_p10, %s5433_s21, 2  ;;  %v4675_v24 = vld [vmem:[%s6911_s2 + $0xa0] ss:$16 sps:$4 sm:$0xff]   ;;  %v4678_v25 = vld [vmem:[%s6911_s2 + $0x8c] ss:$16 sps:$4 sm:$0xff]   ;;  %vm3940_vm1 = vcmask 326656  }
  0x1b   : > { %v4679_v26 = vld [vmem:[%s6911_s2 + $0xc4] ss:$16 sps:$4 sm:$0xff]   ;;  %v4676_v27 = vld [vmem:[%s6911_s2 + $0x88] ss:$16 sps:$4 sm:$0xff]   ;;  %v4681_v28 = vld [vmem:[%s6911_s2 + $0xc0] ss:$16 sps:$4 sm:$0xff]  }
  0x1c   : > { %s4595_s13 = smul.u32 56, %s5475_s24  ;;  %1636 = vmatpush1.bf16.msra.mxu0 %v4657_v11  ;;  %v4684_v29 = vld [vmem:[%s6911_s2 + $0xac] ss:$16 sps:$4 sm:$0xff]   ;;  %v4685_v30 = vld [vmem:[%s6911_s2 + $0xe4] ss:$16 sps:$4 sm:$0xff]   ;;  %s4082_s22 = sshll.u32 %s6187_s26, 3 }
  0x1d   : > { %1637 = vmatprep.subr.bf16.mxu0 %v4661_v14  ;;  %v4682_v31 = vld [vmem:[%s6911_s2 + $0xa8] ss:$16 sps:$4 sm:$0xff]   ;;  %v4687_v32 = vld [vmem:[%s6911_s2 + $0xe0] ss:$16 sps:$4 sm:$0xff]   ;;  %v4690_v33 = vld [vmem:[%s6911_s2 + $0xcc] ss:$16 sps:$4 sm:$0xff]  }
  0x1e   : > { %s5493_s25 = scalar_lea.vmem %s6927_s0, %s4595_s13  ;;  %v4691_v34 = vld [vmem:[%s6911_s2 + $0x104] ss:$16 sps:$4 sm:$0xff]   ;;  %v4688_v35 = vld [vmem:[%s6911_s2 + $0xc8] ss:$16 sps:$4 sm:$0xff]   ;;  %v4693_v36 = vld [vmem:[%s6911_s2 + $0x100] ss:$16 sps:$4 sm:$0xff]  }
  0x1f   : > { %v420_v10 = vld [vmem:[%s5493_s25 + $0x30] sm:$0xff]  ;;  %v4696_v37 = vld [vmem:[%s6911_s2 + $0xec] ss:$16 sps:$4 sm:$0xff]   ;;  %v4694_v39 = vld [vmem:[%s6911_s2 + $0xe8] ss:$16 sps:$4 sm:$0xff]   ;;  %s6196_s29 = scalar_lea.vmem [#allocation4], %s4082_s22 }
  0x20   : > { %v5502_v12 = vpack.c.bf16 %v420_v10, %v420_v10  ;;  %1638 = vmatpush1.bf16.msra.mxu0 %v4663_v16  ;;  %v4697_v38 = vld [vmem:[%s6911_s2 + $0x124] ss:$16 sps:$4 sm:$0xff]   ;;  %v4699_v40 = vld [vmem:[%s6911_s2 + $0x120] ss:$16 sps:$4 sm:$0xff]   ;;  %v4702_v41 = vld [vmem:[%s6911_s2 + $0x10c] ss:$16 sps:$4 sm:$0xff]  }
  0x21   : > { %1639 = vmatprep.subr.bf16.mxu0 %v4667_v18  ;;  %v4703_v42 = vld [vmem:[%s6911_s2 + $0x144] ss:$16 sps:$4 sm:$0xff]   ;;  %v4700_v43 = vld [vmem:[%s6911_s2 + $0x108] ss:$16 sps:$4 sm:$0xff]   ;;  %v4705_v44 = vld [vmem:[%s6911_s2 + $0x140] ss:$16 sps:$4 sm:$0xff]  }
  0x22   : > { %4281 = vmatmul.mubr.msk.bf16.vlgmr.msra.gmra.mrb[0].mxu1 %vm1627_vm0, %v5502_v12  ;;  %v4708_v45 = vld [vmem:[%s6911_s2 + $0x12c] ss:$16 sps:$4 sm:$0xff]   ;;  %v4709_v46 = vld [vmem:[%s6911_s2 + $0x164] ss:$16 sps:$4 sm:$0xff]   ;;  %v4706_v47 = vld [vmem:[%s6911_s2 + $0x128] ss:$16 sps:$4 sm:$0xff]  }
  0x23   : > { %1796 = vmatpush1.bf16.msra.mxu1 %v4652_v8  ;;  %v4711_v48 = vld [vmem:[%s6911_s2 + $0x160] ss:$16 sps:$4 sm:$0xff]   ;;  %v415_v49 = vld [vmem:[%s5493_s25 + $0x8] sm:$0xff]  ;;  %v4715_v51 = vld [vmem:[%s6911_s2 + $0x184] ss:$16 sps:$4 sm:$0xff]   ;;  %vm2329_vm2 = vcmask 1041408  }
  0x24   : > { %1797 = vmatprep.subr.bf16.mxu1 %v4660_v13  ;;  %1640 = vmatpush1.bf16.msra.mxu0 %v4669_v20  ;;  %v4714_v50 = vld [vmem:[%s6911_s2 + $0x14c] ss:$16 sps:$4 sm:$0xff]   ;;  %v423_v52 = vpack.c.bf16 %v415_v49, %v415_v49  ;;  %v4712_v53 = vld [vmem:[%s6911_s2 + $0x148] ss:$16 sps:$4 sm:$0xff]   ;;  %v4717_v54 = vld [vmem:[%s6911_s2 + $0x180] ss:$16 sps:$4 sm:$0xff]  }
  0x25   : > { %1641 = vmatprep.subr.bf16.mxu0 %v4673_v22  ;;  %v4720_v55 = vld [vmem:[%s6911_s2 + $0x16c] ss:$16 sps:$4 sm:$0xff]   ;;  %v4721_v56 = vld [vmem:[%s6911_s2 + $0x1a4] ss:$16 sps:$4 sm:$0xff]   ;;  %v4718_v57 = vld [vmem:[%s6911_s2 + $0x168] ss:$16 sps:$4 sm:$0xff]  }
  0x26   : > { %1663 = vmatprep.mubr.bf16.mxu0 %v423_v52  ;;  %1827 = vmatprep.mubr.bf16.mxu1 %v423_v52  ;;  %v4723_v58 = vld [vmem:[%s6911_s2 + $0x1a0] ss:$16 sps:$4 sm:$0xff]   ;;  %v4726_v59 = vld [vmem:[%s6911_s2 + $0x18c] ss:$16 sps:$4 sm:$0xff]   ;;  %v4727_v60 = vld [vmem:[%s6911_s2 + $0x1c4] ss:$16 sps:$4 sm:$0xff]  }
  0x27   : > { %1798 = vmatpush1.bf16.msra.mxu1 %v4658_v15  ;;  %v4724_v61 = vld [vmem:[%s6911_s2 + $0x188] ss:$16 sps:$4 sm:$0xff]   ;;  %v4729_v62 = vld [vmem:[%s6911_s2 + $0x1c0] ss:$16 sps:$4 sm:$0xff]   ;;  %v4732_v63 = vld [vmem:[%s6911_s2 + $0x1ac] ss:$16 sps:$4 sm:$0xff]  }
  0x28   : > { %1799 = vmatprep.subr.bf16.mxu1 %v4666_v17  ;;  %1642 = vmatpush1.bf16.msra.mxu0 %v4675_v24  ;;  %v4733_v0 = vld [vmem:[%s6911_s2 + $0x1e4] ss:$16 sps:$4 sm:$0xff]   ;;  %v4730_v1 = vld [vmem:[%s6911_s2 + $0x1a8] ss:$16 sps:$4 sm:$0xff]   ;;  %v4735_v3 = vld [vmem:[%s6911_s2 + $0x1e0] ss:$16 sps:$4 sm:$0xff]  }
  0x29   : > { %1643 = vmatprep.subr.bf16.mxu0 %v4679_v26  ;;  %v414_v4 = vld [vmem:[%s5493_s25] sm:$0xff]  ;;  %v4738_v5 = vld [vmem:[%s6911_s2 + $0x1cc] ss:$16 sps:$4 sm:$0xff]   ;;  %v4736_v8 = vld [vmem:[%s6911_s2 + $0x1c8] ss:$16 sps:$4 sm:$0xff]   ;;  %s5349_s15 = smov 108  }
  0x2a   : > { %v4741_v6 = vld [vmem:[%s6911_s2 + $0x204] ss:$16 sps:$4 sm:$0xff]   ;;  %v422_v7 = vpack.c.bf16 %v414_v4, %v414_v4  ;;  %v4739_v9 = vld [vmem:[%s6911_s2 + $0x200] ss:$16 sps:$4 sm:$0xff]   ;;  %v4744_v10 = vld [vmem:[%s6911_s2 + $0x1ec] ss:$16 sps:$4 sm:$0xff]  }
  0x2b   : > { %1800 = vmatpush1.bf16.msra.mxu1 %v4664_v19  ;;  %v4747_v11 = vld [vmem:[%s6911_s2 + $0x224] ss:$16 sps:$4 sm:$0xff]   ;;  %v4742_v13 = vld [vmem:[%s6911_s2 + $0x1e8] ss:$16 sps:$4 sm:$0xff]   ;;  %v4745_v14 = vld [vmem:[%s6911_s2 + $0x220] ss:$16 sps:$4 sm:$0xff]  }
  0x2c   : > { %1801 = vmatprep.subr.bf16.mxu1 %v4672_v21  ;;  %1644 = vmatpush1.bf16.msra.mxu0 %v4681_v28  ;;  %v4750_v15 = vld [vmem:[%s6911_s2 + $0x20c] ss:$16 sps:$4 sm:$0xff]   ;;  %v4753_v16 = vld [vmem:[%s6911_s2 + $0x244] ss:$16 sps:$4 sm:$0xff]   ;;  %v4748_v17 = vld [vmem:[%s6911_s2 + $0x208] ss:$16 sps:$4 sm:$0xff]  }
  0x2d   : > { %1645 = vmatprep.subr.bf16.mxu0 %v4685_v30  ;;  %v4751_v18 = vld [vmem:[%s6911_s2 + $0x240] ss:$16 sps:$4 sm:$0xff]   ;;  %v4756_v19 = vld [vmem:[%s6911_s2 + $0x22c] ss:$16 sps:$4 sm:$0xff]   ;;  %v4759_v20 = vld [vmem:[%s6911_s2 + $0x264] ss:$16 sps:$4 sm:$0xff]  }
  0x2e   : > { %v4754_v21 = vld [vmem:[%s6911_s2 + $0x228] ss:$16 sps:$4 sm:$0xff]   ;;  %v4757_v22 = vld [vmem:[%s6911_s2 + $0x260] ss:$16 sps:$4 sm:$0xff]   ;;  %v4765_v24 = vld [vmem:[%s6911_s2 + $0x284] ss:$16 sps:$4 sm:$0xff]  }
  0x2f   : > { %1802 = vmatpush1.bf16.msra.mxu1 %v4670_v23  ;;  %v4762_v23 = vld [vmem:[%s6911_s2 + $0x24c] ss:$16 sps:$4 sm:$0xff]   ;;  %v4763_v26 = vld [vmem:[%s6911_s2 + $0x280] ss:$16 sps:$4 sm:$0xff]   ;;  %v4771_v28 = vld [vmem:[%s6911_s2 + $0x2a4] ss:$16 sps:$4 sm:$0xff]  }
  0x30   : > { %1803 = vmatprep.subr.bf16.mxu1 %v4678_v25  ;;  %1646 = vmatpush1.bf16.msra.mxu0 %v4687_v32  ;;  %v4760_v25 = vld [vmem:[%s6911_s2 + $0x248] ss:$16 sps:$4 sm:$0xff]   ;;  %v4769_v30 = vld [vmem:[%s6911_s2 + $0x2a0] ss:$16 sps:$4 sm:$0xff]   ;;  %v4777_v32 = vld [vmem:[%s6911_s2 + $0x2c4] ss:$16 sps:$4 sm:$0xff]  }
  0x31   : > { %1647 = vmatprep.subr.bf16.mxu0 %v4691_v34  ;;  %v417_v34 = vld [vmem:[%s5493_s25 + $0x18] sm:$0xff]  ;;  %v4799_v52 = vld [vmem:[%s6911_s2 + $0x340] ss:$16 sps:$4 sm:$0xff]   ;;  %s4084_s12 = sshll.u32 %s5475_s24, 3  ;;  %vm2325_vm3 = vcmask 162816   ;;  %s4503_s30 = sshll.u32 %s5433_s21, 7 }
  0x32   : > { %v4798_v49 = vld [vmem:[%s6911_s2 + $0x30c] ss:$16 sps:$4 sm:$0xff]   ;;  %v4820_v4 = vld [vmem:[%s6911_s2 + $0x388] ss:$16 sps:$4 sm:$0xff]   ;;  %s6818_s0 = scalar_lea.hbm %s6920_s11, %s4503_s30  ;;  %s5350_s13 = smov [#allocation4]  }
  0x33   : > { %1804 = vmatpush1.bf16.msra.mxu1 %v4676_v27  ;;  %v4768_v27 = vld [vmem:[%s6911_s2 + $0x26c] ss:$16 sps:$4 sm:$0xff]  }
  0x34   : > { %1805 = vmatprep.subr.bf16.mxu1 %v4684_v29  ;;  %1648 = vmatpush1.bf16.msra.mxu0 %v4693_v36  ;;  %v4766_v29 = vld [vmem:[%s6911_s2 + $0x268] ss:$16 sps:$4 sm:$0xff]   ;;  %v4780_v36 = vld [vmem:[%s6911_s2 + $0x2ac] ss:$16 sps:$4 sm:$0xff]  }
  0x35   : > { %1649 = vmatprep.subr.bf16.mxu0 %v4697_v38  ;;  %v4783_v38 = vld [vmem:[%s6911_s2 + $0x2e4] ss:$16 sps:$4 sm:$0xff]  }
  0x37   : > { %1806 = vmatpush1.bf16.msra.mxu1 %v4682_v31  ;;  %v4774_v31 = vld [vmem:[%s6911_s2 + $0x28c] ss:$16 sps:$4 sm:$0xff]  }
  0x38   : > { %1807 = vmatprep.subr.bf16.mxu1 %v4690_v33  ;;  %1650 = vmatpush1.bf16.msra.mxu0 %v4699_v40  ;;  %v4772_v33 = vld [vmem:[%s6911_s2 + $0x288] ss:$16 sps:$4 sm:$0xff]   ;;  %v4781_v40 = vld [vmem:[%s6911_s2 + $0x2e0] ss:$16 sps:$4 sm:$0xff]  }
  0x39   : > { %1651 = vmatprep.subr.bf16.mxu0 %v4703_v42  ;;  %v4789_v42 = vld [vmem:[%s6911_s2 + $0x304] ss:$16 sps:$4 sm:$0xff]  }
  0x3b   : > { %1808 = vmatpush1.bf16.msra.mxu1 %v4688_v35  ;;  %v4775_v35 = vld [vmem:[%s6911_s2 + $0x2c0] ss:$16 sps:$4 sm:$0xff]  }
  0x3c   : > { %1809 = vmatprep.subr.bf16.mxu1 %v4696_v37  ;;  %1652 = vmatpush1.bf16.msra.mxu0 %v4705_v44  ;;  %v425_v37 = vpack.c.bf16 %v417_v34, %v417_v34  ;;  %v4787_v44 = vld [vmem:[%s6911_s2 + $0x300] ss:$16 sps:$4 sm:$0xff]  }
  0x3d   : > { %1653 = vmatprep.subr.bf16.mxu0 %v4709_v46  ;;  %v4795_v46 = vld [vmem:[%s6911_s2 + $0x324] ss:$16 sps:$4 sm:$0xff]   ;;  %v4859_v34 = vld [vmem:[%s6911_s2 + $0x480] ss:$16 sps:$4 sm:$0xff]  }
  0x3f   : > { %1810 = vmatpush1.bf16.msra.mxu1 %v4694_v39  ;;  %v4778_v39 = vld [vmem:[%s6911_s2 + $0x2a8] ss:$16 sps:$4 sm:$0xff]  }
  0x40   : > { %1811 = vmatprep.subr.bf16.mxu1 %v4702_v41  ;;  %1654 = vmatpush1.bf16.msra.mxu0 %v4711_v48  ;;  %v4786_v41 = vld [vmem:[%s6911_s2 + $0x2cc] ss:$16 sps:$4 sm:$0xff]   ;;  %v4793_v48 = vld [vmem:[%s6911_s2 + $0x320] ss:$16 sps:$4 sm:$0xff]  }
  0x41   : > { %1655 = vmatprep.subr.bf16.mxu0 %v4715_v51  ;;  %v4796_v51 = vld [vmem:[%s6911_s2 + $0x308] ss:$16 sps:$4 sm:$0xff]  }
  0x43   : > { %1812 = vmatpush1.bf16.msra.mxu1 %v4700_v43  ;;  %v4784_v43 = vld [vmem:[%s6911_s2 + $0x2c8] ss:$16 sps:$4 sm:$0xff]  }
  0x44   : > { %1813 = vmatprep.subr.bf16.mxu1 %v4708_v45  ;;  %1656 = vmatpush1.bf16.msra.mxu0 %v4717_v54  ;;  %v4792_v45 = vld [vmem:[%s6911_s2 + $0x2ec] ss:$16 sps:$4 sm:$0xff]   ;;  %v4807_v54 = vld [vmem:[%s6911_s2 + $0x364] ss:$16 sps:$4 sm:$0xff]  }
  0x45   : > { %1657 = vmatprep.subr.bf16.mxu0 %v4721_v56  ;;  %v4805_v56 = vld [vmem:[%s6911_s2 + $0x360] ss:$16 sps:$4 sm:$0xff]  }
  0x47   : > { %1814 = vmatpush1.bf16.msra.mxu1 %v4706_v47  ;;  %v4790_v47 = vld [vmem:[%s6911_s2 + $0x2e8] ss:$16 sps:$4 sm:$0xff]  }
  0x48   : > { %1815 = vmatprep.subr.bf16.mxu1 %v4714_v50  ;;  %1658 = vmatpush1.bf16.msra.mxu0 %v4723_v58  ;;  %v4801_v50 = vld [vmem:[%s6911_s2 + $0x344] ss:$16 sps:$4 sm:$0xff]  }
  0x49   : > { %1659 = vmatprep.subr.bf16.mxu0 %v4727_v60  ;;  %v4813_v58 = vld [vmem:[%s6911_s2 + $0x384] ss:$16 sps:$4 sm:$0xff]   ;;  %v4811_v60 = vld [vmem:[%s6911_s2 + $0x380] ss:$16 sps:$4 sm:$0xff]  }
  0x4b   : > { %1816 = vmatpush1.bf16.msra.mxu1 %v4712_v53  ;;  %v4804_v53 = vld [vmem:[%s6911_s2 + $0x32c] ss:$16 sps:$4 sm:$0xff]  }
  0x4c   : > { %1817 = vmatprep.subr.bf16.mxu1 %v4720_v55  ;;  %1660 = vmatpush1.bf16.msra.mxu0 %v4729_v62  ;;  %v4802_v55 = vld [vmem:[%s6911_s2 + $0x328] ss:$16 sps:$4 sm:$0xff]   ;;  %v4819_v62 = vld [vmem:[%s6911_s2 + $0x3a4] ss:$16 sps:$4 sm:$0xff]  }
  0x4d   : > { %1661 = vmatprep.subr.bf16.mxu0 %v4733_v0  ;;  %v4817_v0 = vld [vmem:[%s6911_s2 + $0x3a0] ss:$16 sps:$4 sm:$0xff]  }
  0x4f   : > { %1818 = vmatpush1.bf16.msra.mxu1 %v4718_v57  ;;  %v4810_v57 = vld [vmem:[%s6911_s2 + $0x34c] ss:$16 sps:$4 sm:$0xff]  }
  0x50   : > { %1819 = vmatprep.subr.bf16.mxu1 %v4726_v59  ;;  %1662 = vmatpush1.bf16.msra.mxu0 %v4735_v3  ;;  %v4808_v59 = vld [vmem:[%s6911_s2 + $0x348] ss:$16 sps:$4 sm:$0xff]   ;;  %v4825_v3 = vld [vmem:[%s6911_s2 + $0x3c4] ss:$16 sps:$4 sm:$0xff]  }
  0x51   : > { %1672 = vmatprep.subr.bf16.mxu0 %v4741_v6  ;;  %v4828_v6 = vld [vmem:[%s6911_s2 + $0x3ac] ss:$16 sps:$4 sm:$0xff]  }
  0x53   : > { %1820 = vmatpush1.bf16.msra.mxu1 %v4724_v61  ;;  %1664 = vmatmul.mubr.bf16.vlgmr.msra.gmra.mrb[0].mxu0 %v422_v7  ;;  %v4816_v61 = vld [vmem:[%s6911_s2 + $0x36c] ss:$16 sps:$4 sm:$0xff]  }
  0x54   : > { %1821 = vmatprep.subr.bf16.mxu1 %v4732_v63  ;;  %1673 = vmatpush1.bf16.msra.mxu0 %v4739_v9  ;;  %v4814_v63 = vld [vmem:[%s6911_s2 + $0x368] ss:$16 sps:$4 sm:$0xff]   ;;  %v4829_v9 = vld [vmem:[%s6911_s2 + $0x3e0] ss:$16 sps:$4 sm:$0xff]  }
  0x55   : > { %1674 = vmatprep.subr.bf16.mxu0 %v4747_v11  ;;  %1704 = vmatprep.mubr.bf16.mxu0 %v425_v37  ;;  %v416_v11 = vld [vmem:[%s5493_s25 + $0x10] sm:$0xff] }
  0x57   : > { %1822 = vmatpush1.bf16.msra.mxu1 %v4730_v1  ;;  %v4822_v1 = vld [vmem:[%s6911_s2 + $0x38c] ss:$16 sps:$4 sm:$0xff]  }
  0x58   : > { %1823 = vmatprep.subr.bf16.mxu1 %v4738_v5  ;;  %1675 = vmatpush1.bf16.msra.mxu0 %v4745_v14  ;;  %v4823_v5 = vld [vmem:[%s6911_s2 + $0x3c0] ss:$16 sps:$4 sm:$0xff]   ;;  %v4832_v14 = vld [vmem:[%s6911_s2 + $0x3c8] ss:$16 sps:$4 sm:$0xff]  }
  0x59   : > { %1676 = vmatprep.subr.bf16.mxu0 %v4753_v16  ;;  %v424_v16 = vpack.c.bf16 %v416_v11, %v416_v11  ;;  %v4919_v11 = vld [vmem:[%s6911_s2 + $0x5c0] ss:$16 sps:$4 sm:$0xff]  }
  0x5b   : > { %1824 = vmatpush1.bf16.msra.mxu1 %v4736_v8  ;;  %v4826_v8 = vld [vmem:[%s6911_s2 + $0x3a8] ss:$16 sps:$4 sm:$0xff]  }
  0x5c   : > { %1825 = vmatprep.subr.bf16.mxu1 %v4744_v10  ;;  %1677 = vmatpush1.bf16.msra.mxu0 %v4751_v18  ;;  %v4834_v10 = vld [vmem:[%s6911_s2 + $0x3cc] ss:$16 sps:$4 sm:$0xff]   ;;  %v4843_v18 = vld [vmem:[%s6911_s2 + $0x424] ss:$16 sps:$4 sm:$0xff]  }
  0x5d   : > { %1678 = vmatprep.subr.bf16.mxu0 %v4759_v20 }
  0x5f   : > { %1826 = vmatpush1.bf16.msra.mxu1 %v4742_v13  ;;  %v4837_v13 = vld [vmem:[%s6911_s2 + $0x404] ss:$16 sps:$4 sm:$0xff]  }
  0x60   : > { %1836 = vmatprep.subr.bf16.mxu1 %v4750_v15  ;;  %1679 = vmatpush1.bf16.msra.mxu0 %v4757_v22  ;;  %v4835_v15 = vld [vmem:[%s6911_s2 + $0x400] ss:$16 sps:$4 sm:$0xff]  }
  0x61   : > { %1680 = vmatprep.subr.bf16.mxu0 %v4765_v24  ;;  %v4841_v22 = vld [vmem:[%s6911_s2 + $0x420] ss:$16 sps:$4 sm:$0xff]   ;;  %v4849_v24 = vld [vmem:[%s6911_s2 + $0x444] ss:$16 sps:$4 sm:$0xff]  }
  0x62   : > { %1828 = vmatmul.mubr.bf16.vlgmr.msra.gmra.mrb[4].mxu1 %v422_v7  ;;  %v4831_v7 = vld [vmem:[%s6911_s2 + $0x3e4] ss:$16 sps:$4 sm:$0xff]  }
  0x63   : > { %1837 = vmatpush1.bf16.msra.mxu1 %v4748_v17  ;;  %1868 = vmatprep.mubr.bf16.mxu1 %v425_v37  ;;  %v4840_v17 = vld [vmem:[%s6911_s2 + $0x3ec] ss:$16 sps:$4 sm:$0xff]   ;;  %v4862_v37 = vld [vmem:[%s6911_s2 + $0x468] ss:$16 sps:$4 sm:$0xff]  }
  0x64   : > { %1838 = vmatprep.subr.bf16.mxu1 %v4756_v19  ;;  %1681 = vmatpush1.bf16.msra.mxu0 %v4763_v26  ;;  %v419_v19 = vld [vmem:[%s5493_s25 + $0x28] sm:$0xff]  ;;  %v4847_v26 = vld [vmem:[%s6911_s2 + $0x440] ss:$16 sps:$4 sm:$0xff]  }
  0x65   : > { %1682 = vmatprep.subr.bf16.mxu0 %v4771_v28  ;;  %v427_v20 = vpack.c.bf16 %v419_v19, %v419_v19  ;;  %v4855_v28 = vld [vmem:[%s6911_s2 + $0x464] ss:$16 sps:$4 sm:$0xff]  }
  0x66   : > { %v4937_v19 = vld [vmem:[%s6913_s4 + $0x40] sm:$0xff]  }
  0x67   : > { %1839 = vmatpush1.bf16.msra.mxu1 %v4754_v21  ;;  %v4838_v21 = vld [vmem:[%s6911_s2 + $0x3e8] ss:$16 sps:$4 sm:$0xff]  }
  0x68   : > { %1840 = vmatprep.subr.bf16.mxu1 %v4762_v23  ;;  %1683 = vmatpush1.bf16.msra.mxu0 %v4769_v30  ;;  %v4846_v23 = vld [vmem:[%s6911_s2 + $0x40c] ss:$16 sps:$4 sm:$0xff]   ;;  %v4853_v30 = vld [vmem:[%s6911_s2 + $0x460] ss:$16 sps:$4 sm:$0xff]  }
  0x69   : > { %1684 = vmatprep.subr.bf16.mxu0 %v4777_v32  ;;  %v4861_v32 = vld [vmem:[%s6911_s2 + $0x484] ss:$16 sps:$4 sm:$0xff]  }
  0x6b   : > { %1841 = vmatpush1.bf16.msra.mxu1 %v4760_v25  ;;  %v4844_v25 = vld [vmem:[%s6911_s2 + $0x408] ss:$16 sps:$4 sm:$0xff]  }
  0x6c   : > { %1842 = vmatprep.subr.bf16.mxu1 %v4768_v27  ;;  %1685 = vmatpush1.bf16.msra.mxu0 %v4775_v35  ;;  %v4852_v27 = vld [vmem:[%s6911_s2 + $0x42c] ss:$16 sps:$4 sm:$0xff]  }
  0x6d   : > { %1686 = vmatprep.subr.bf16.mxu0 %v4783_v38  ;;  %v4864_v35 = vld [vmem:[%s6911_s2 + $0x46c] ss:$16 sps:$4 sm:$0xff]   ;;  %v4865_v38 = vld [vmem:[%s6911_s2 + $0x4a0] ss:$16 sps:$4 sm:$0xff]  }
  0x6f   : > { %1843 = vmatpush1.bf16.msra.mxu1 %v4766_v29  ;;  %v4850_v29 = vld [vmem:[%s6911_s2 + $0x428] ss:$16 sps:$4 sm:$0xff]  }
  0x70   : > { %1844 = vmatprep.subr.bf16.mxu1 %v4774_v31  ;;  %1687 = vmatpush1.bf16.msra.mxu0 %v4781_v40  ;;  %v4858_v31 = vld [vmem:[%s6911_s2 + $0x44c] ss:$16 sps:$4 sm:$0xff]   ;;  %v4873_v40 = vld [vmem:[%s6911_s2 + $0x4c4] ss:$16 sps:$4 sm:$0xff]  }
  0x71   : > { %1688 = vmatprep.subr.bf16.mxu0 %v4789_v42  ;;  %v4871_v42 = vld [vmem:[%s6911_s2 + $0x4c0] ss:$16 sps:$4 sm:$0xff]  }
  0x73   : > { %1845 = vmatpush1.bf16.msra.mxu1 %v4772_v33  ;;  %v4856_v33 = vld [vmem:[%s6911_s2 + $0x448] ss:$16 sps:$4 sm:$0xff]  }
  0x74   : > { %1846 = vmatprep.subr.bf16.mxu1 %v4780_v36  ;;  %1689 = vmatpush1.bf16.msra.mxu0 %v4787_v44  ;;  %v4867_v36 = vld [vmem:[%s6911_s2 + $0x4a4] ss:$16 sps:$4 sm:$0xff]  }
  0x75   : > { %1690 = vmatprep.subr.bf16.mxu0 %v4795_v46  ;;  %v4879_v44 = vld [vmem:[%s6911_s2 + $0x4e4] ss:$16 sps:$4 sm:$0xff]   ;;  %v4877_v46 = vld [vmem:[%s6911_s2 + $0x4e0] ss:$16 sps:$4 sm:$0xff]  }
  0x77   : > { %1847 = vmatpush1.bf16.msra.mxu1 %v4778_v39  ;;  %v4870_v39 = vld [vmem:[%s6911_s2 + $0x48c] ss:$16 sps:$4 sm:$0xff]  }
  0x78   : > { %1848 = vmatprep.subr.bf16.mxu1 %v4786_v41  ;;  %1691 = vmatpush1.bf16.msra.mxu0 %v4793_v48  ;;  %v4868_v41 = vld [vmem:[%s6911_s2 + $0x488] ss:$16 sps:$4 sm:$0xff]   ;;  %v4885_v48 = vld [vmem:[%s6911_s2 + $0x504] ss:$16 sps:$4 sm:$0xff]  }
  0x79   : > { %1692 = vmatprep.subr.bf16.mxu0 %v4801_v50  ;;  %v4883_v50 = vld [vmem:[%s6911_s2 + $0x500] ss:$16 sps:$4 sm:$0xff]  }
  0x7b   : > { %1849 = vmatpush1.bf16.msra.mxu1 %v4784_v43  ;;  %v4876_v43 = vld [vmem:[%s6911_s2 + $0x4ac] ss:$16 sps:$4 sm:$0xff]  }
  0x7c   : > { %1850 = vmatprep.subr.bf16.mxu1 %v4792_v45  ;;  %1693 = vmatpush1.bf16.msra.mxu0 %v4799_v52  ;;  %v4874_v45 = vld [vmem:[%s6911_s2 + $0x4a8] ss:$16 sps:$4 sm:$0xff]   ;;  %v4891_v52 = vld [vmem:[%s6911_s2 + $0x524] ss:$16 sps:$4 sm:$0xff]  }
  0x7d   : > { %1694 = vmatprep.subr.bf16.mxu0 %v4807_v54  ;;  %v4889_v54 = vld [vmem:[%s6911_s2 + $0x520] ss:$16 sps:$4 sm:$0xff]  }
  0x7f   : > { %1851 = vmatpush1.bf16.msra.mxu1 %v4790_v47  ;;  %v4882_v47 = vld [vmem:[%s6911_s2 + $0x4cc] ss:$16 sps:$4 sm:$0xff]  }
  0x80   : > { %1852 = vmatprep.subr.bf16.mxu1 %v4798_v49  ;;  %1695 = vmatpush1.bf16.msra.mxu0 %v4805_v56  ;;  %v4880_v49 = vld [vmem:[%s6911_s2 + $0x4c8] ss:$16 sps:$4 sm:$0xff]   ;;  %v4897_v56 = vld [vmem:[%s6911_s2 + $0x544] ss:$16 sps:$4 sm:$0xff]  }
  0x81   : > { %1696 = vmatprep.subr.bf16.mxu0 %v4813_v58  ;;  %v4895_v58 = vld [vmem:[%s6911_s2 + $0x540] ss:$16 sps:$4 sm:$0xff]  }
  0x83   : > { %1853 = vmatpush1.bf16.msra.mxu1 %v4796_v51  ;;  %v4888_v51 = vld [vmem:[%s6911_s2 + $0x4ec] ss:$16 sps:$4 sm:$0xff]  }
  0x84   : > { %1854 = vmatprep.subr.bf16.mxu1 %v4804_v53  ;;  %1697 = vmatpush1.bf16.msra.mxu0 %v4811_v60  ;;  %v4886_v53 = vld [vmem:[%s6911_s2 + $0x4e8] ss:$16 sps:$4 sm:$0xff]   ;;  %v4903_v60 = vld [vmem:[%s6911_s2 + $0x564] ss:$16 sps:$4 sm:$0xff]  }
  0x85   : > { %1698 = vmatprep.subr.bf16.mxu0 %v4819_v62  ;;  %v4901_v62 = vld [vmem:[%s6911_s2 + $0x560] ss:$16 sps:$4 sm:$0xff]  }
  0x87   : > { %1855 = vmatpush1.bf16.msra.mxu1 %v4802_v55  ;;  %v4894_v55 = vld [vmem:[%s6911_s2 + $0x50c] ss:$16 sps:$4 sm:$0xff]  }
  0x88   : > { %1856 = vmatprep.subr.bf16.mxu1 %v4810_v57  ;;  %1699 = vmatpush1.bf16.msra.mxu0 %v4817_v0  ;;  %v4892_v57 = vld [vmem:[%s6911_s2 + $0x508] ss:$16 sps:$4 sm:$0xff]   ;;  %v4909_v0 = vld [vmem:[%s6911_s2 + $0x584] ss:$16 sps:$4 sm:$0xff]  }
  0x89   : > { %1700 = vmatprep.subr.bf16.mxu0 %v4825_v3  ;;  %v4907_v3 = vld [vmem:[%s6911_s2 + $0x580] ss:$16 sps:$4 sm:$0xff]  }
  0x8b   : > { %1857 = vmatpush1.bf16.msra.mxu1 %v4808_v59  ;;  %v4900_v59 = vld [vmem:[%s6911_s2 + $0x52c] ss:$16 sps:$4 sm:$0xff]  }
  0x8c   : > { %1858 = vmatprep.subr.bf16.mxu1 %v4816_v61  ;;  %1701 = vmatpush1.bf16.msra.mxu0 %v4823_v5  ;;  %v4898_v61 = vld [vmem:[%s6911_s2 + $0x528] ss:$16 sps:$4 sm:$0xff]   ;;  %v4915_v5 = vld [vmem:[%s6911_s2 + $0x5a4] ss:$16 sps:$4 sm:$0xff]  }
  0x8d   : > { %1702 = vmatprep.subr.bf16.mxu0 %v4831_v7  ;;  %v4913_v7 = vld [vmem:[%s6911_s2 + $0x5a0] ss:$16 sps:$4 sm:$0xff]  }
  0x8f   : > { %1859 = vmatpush1.bf16.msra.mxu1 %v4814_v63  ;;  %v4906_v63 = vld [vmem:[%s6911_s2 + $0x54c] ss:$16 sps:$4 sm:$0xff]  }
  0x90   : > { %1860 = vmatprep.subr.bf16.mxu1 %v4822_v1  ;;  %1703 = vmatpush1.bf16.msra.mxu0 %v4829_v9  ;;  %v4904_v1 = vld [vmem:[%s6911_s2 + $0x548] ss:$16 sps:$4 sm:$0xff]   ;;  %v4921_v9 = vld [vmem:[%s6911_s2 + $0x5c4] ss:$16 sps:$4 sm:$0xff]  }
  0x91   : > { %1713 = vmatprep.subr.bf16.mxu0 %v4837_v13  ;;  %v4924_v13 = vld [vmem:[%s6911_s2 + $0x5ac] ss:$16 sps:$4 sm:$0xff]  }
  0x93   : > { %1861 = vmatpush1.bf16.msra.mxu1 %v4820_v4  ;;  %1705 = vmatmul.mubr.bf16.vlgmr.msra.gmra.mrb[0].mxu0 %v424_v16  ;;  %v4912_v4 = vld [vmem:[%s6911_s2 + $0x56c] ss:$16 sps:$4 sm:$0xff]  }
  0x94   : > { %1862 = vmatprep.subr.bf16.mxu1 %v4828_v6  ;;  %1714 = vmatpush1.bf16.msra.mxu0 %v4835_v15  ;;  %v4910_v6 = vld [vmem:[%s6911_s2 + $0x568] ss:$16 sps:$4 sm:$0xff]  }
  0x95   : > { %1715 = vmatprep.subr.bf16.mxu0 %v4843_v18  ;;  %1745 = vmatprep.mubr.bf16.mxu0 %v427_v20  ;;  %v4922_v15 = vld [vmem:[%s6911_s2 + $0x5a8] ss:$16 sps:$4 sm:$0xff]   ;;  %v4930_v18 = vld [vmem:[%s6911_s2 + $0x5cc] ss:$16 sps:$4 sm:$0xff]  }
  0x97   : > { %1863 = vmatpush1.bf16.msra.mxu1 %v4826_v8  ;;  %v4918_v8 = vld [vmem:[%s6911_s2 + $0x58c] ss:$16 sps:$4 sm:$0xff]  }
  0x98   : > { %1864 = vmatprep.subr.bf16.mxu1 %v4834_v10  ;;  %1716 = vmatpush1.bf16.msra.mxu0 %v4841_v22  ;;  %v4916_v10 = vld [vmem:[%s6911_s2 + $0x588] ss:$16 sps:$4 sm:$0xff]  }
  0x99   : > { %1717 = vmatprep.subr.bf16.mxu0 %v4849_v24  ;;  %v4939_v24 = vld [vmem:[%s6913_s4 + $0x48] sm:$0xff]  }
  0x9b   : > { %1865 = vmatpush1.bf16.msra.mxu1 %v4832_v14  ;;  %v4927_v14 = vld [vmem:[%s6911_s2 + $0x5e4] ss:$16 sps:$4 sm:$0xff]  }
  0x9c   : > { %1866 = vmatprep.subr.bf16.mxu1 %v4840_v17  ;;  %1718 = vmatpush1.bf16.msra.mxu0 %v4847_v26  ;;  %v418_v17 = vld [vmem:[%s5493_s25 + $0x20] sm:$0xff]  ;;  %v4940_v26 = vld [vmem:[%s6913_s4 + $0x8] sm:$0xff]   ;;  %s3975_s25 = sshll.u32 %s6196_s29, 4  ;;  %s6820_s25 = int_to_ptr.vmem [resolvable:$true] %s3975_s25 }
  0x9d   : > { %1719 = vmatprep.subr.bf16.mxu0 %v4855_v28  ;;  %v426_v22 = vpack.c.bf16 %v418_v17, %v418_v17  ;;  %v4941_v28 = vld [vmem:[%s6913_s4 + $0x50] sm:$0xff]   ;;  %s5252_s19 = scalar_lea.vmem %s6820_s25, 128 }
  0x9e   : > { %p5253_p11 = scmp.ne.s32.totalorder %s6820_s25, %s5252_s19 }
  0x9f   : > { %1867 = vmatpush1.bf16.msra.mxu1 %v4838_v21  ;;  %v4938_v21 = vld [vmem:[%s6913_s4] sm:$0xff]  }
  0xa0   : > { %1877 = vmatprep.subr.bf16.mxu1 %v4846_v23  ;;  %1720 = vmatpush1.bf16.msra.mxu0 %v4853_v30  ;;  %v4933_v23 = vld [vmem:[%s6911_s2 + $0x5ec] ss:$16 sps:$4 sm:$0xff]   ;;  %v4942_v30 = vld [vmem:[%s6913_s4 + $0x10] sm:$0xff]   ;;  %p5254_p12 = pnand %p5253_p11, %p5450_p5 }
  0xa1   : > { %1721 = vmatprep.subr.bf16.mxu0 %v4861_v32  ;;  %v4944_v32 = vld [vmem:[%s6913_s4 + $0x18] sm:$0xff]  }
  0xa2   : > { %1869 = vmatmul.mubr.bf16.vlgmr.msra.gmra.mrb[4].mxu1 %v424_v16  ;;  %v4925_v16 = vld [vmem:[%s6911_s2 + $0x5e0] ss:$16 sps:$4 sm:$0xff]   ;;  %p5255_p13 = pneg %p5254_p12 }
  0xa3   : > { %1878 = vmatpush1.bf16.msra.mxu1 %v4844_v25  ;;  %1909 = vmatprep.mubr.bf16.mxu1 %v427_v20  ;;  %v4928_v20 = vld [vmem:[%s6911_s2 + $0x5c8] ss:$16 sps:$4 sm:$0xff]  }
  0xa4   : > { %1879 = vmatprep.subr.bf16.mxu1 %v4852_v27  ;;  %1722 = vmatpush1.bf16.msra.mxu0 %v4859_v34  ;;  %v4931_v25 = vld [vmem:[%s6911_s2 + $0x5e8] ss:$16 sps:$4 sm:$0xff]   ;;  %v4936_v27 = vld [vmem:[%s6911_s2 + $0x60c] ss:$16 sps:$4 sm:$0xff]   ;;  %v4947_v34 = vld [vmem:[%s6913_s4 + $0x20] sm:$0xff]  }
  0xa5   : > { %1723 = vmatprep.subr.bf16.mxu0 %v4867_v36  ;;  %v4945_v36 = vld [vmem:[%s6913_s4 + $0x80] sm:$0xff]  }
  0xa7   : > { %1880 = vmatpush1.bf16.msra.mxu1 %v4850_v29  ;;  %v4934_v29 = vld [vmem:[%s6911_s2 + $0x608] ss:$16 sps:$4 sm:$0xff]  }
  0xa8   : > { %1881 = vmatprep.subr.bf16.mxu1 %v4858_v31  ;;  %1724 = vmatpush1.bf16.msra.mxu0 %v4865_v38  ;;  %v4943_v31 = vld [vmem:[%s6913_s4 + $0x58] sm:$0xff]  }
  0xa9   : > { %1725 = vmatprep.subr.bf16.mxu0 %v4873_v40 }
  0xab   : > { %1882 = vmatpush1.bf16.msra.mxu1 %v4856_v33  ;;  %v4946_v33 = vld [vmem:[%s6913_s4 + $0x60] sm:$0xff]  }
  0xac   : > { %1883 = vmatprep.subr.bf16.mxu1 %v4864_v35  ;;  %1726 = vmatpush1.bf16.msra.mxu0 %v4871_v42  ;;  %v4949_v35 = vld [vmem:[%s6913_s4 + $0x68] sm:$0xff]  }
  0xad   : > { %1727 = vmatprep.subr.bf16.mxu0 %v4879_v44  ;;  %v4950_v42 = vld [vmem:[%s6913_s4 + $0x28] sm:$0xff]   ;;  %v4953_v44 = vld [vmem:[%s6913_s4 + $0x30] sm:$0xff]  }
  0xaf   : > { %1884 = vmatpush1.bf16.msra.mxu1 %v4862_v37  ;;  %v4948_v37 = vld [vmem:[%s6913_s4 + $0x88] sm:$0xff]  }
  0xb0   : > { %1885 = vmatprep.subr.bf16.mxu1 %v4870_v39  ;;  %1728 = vmatpush1.bf16.msra.mxu0 %v4877_v46  ;;  %v4955_v46 = vld [vmem:[%s6913_s4 + $0x78] sm:$0xff]  }
  0xb1   : > { %1729 = vmatprep.subr.bf16.mxu0 %v4885_v48  ;;  %v4957_v48 = vld [vmem:[%s6913_s4 + $0xa0] sm:$0xff]  }
  0xb3   : > { %1886 = vmatpush1.bf16.msra.mxu1 %v4868_v41 }
  0xb4   : > { %1887 = vmatprep.subr.bf16.mxu1 %v4876_v43  ;;  %1730 = vmatpush1.bf16.msra.mxu0 %v4883_v50  ;;  %v4951_v43 = vld [vmem:[%s6913_s4 + $0x90] sm:$0xff]  }
  0xb5   : > { %1731 = vmatprep.subr.bf16.mxu0 %v4891_v52  ;;  %v4959_v50 = vld [vmem:[%s6913_s4 + $0xb0] sm:$0xff]   ;;  %v4961_v52 = vld [vmem:[%s6913_s4 + $0xc0] sm:$0xff]  }
  0xb7   : > { %1888 = vmatpush1.bf16.msra.mxu1 %v4874_v45  ;;  %v4954_v45 = vld [vmem:[%s6913_s4 + $0x98] sm:$0xff]  }
  0xb8   : > { %1889 = vmatprep.subr.bf16.mxu1 %v4882_v47  ;;  %1732 = vmatpush1.bf16.msra.mxu0 %v4889_v54  ;;  %v4956_v47 = vld [vmem:[%s6913_s4 + $0x38] sm:$0xff]  }
  0xb9   : > { %1733 = vmatprep.subr.bf16.mxu0 %v4897_v56  ;;  %v625_v56 = vld [vmem:[%s6912_s3] sm:$0xf] }
  0xbb   : > { %1890 = vmatpush1.bf16.msra.mxu1 %v4880_v49  ;;  %v4958_v49 = vld [vmem:[%s6913_s4 + $0xa8] sm:$0xff]  }
  0xbc   : > { %1891 = vmatprep.subr.bf16.mxu1 %v4888_v51  ;;  %1734 = vmatpush1.bf16.msra.mxu0 %v4895_v58  ;;  %v4960_v51 = vld [vmem:[%s6913_s4 + $0xb8] sm:$0xff]  }
  0xbd   : > { %1735 = vmatprep.subr.bf16.mxu0 %v4903_v60 }
  0xbf   : > { %1892 = vmatpush1.bf16.msra.mxu1 %v4886_v53  ;;  %v627_v53 = vlaneseq }
  0xc0   : > { %1893 = vmatprep.subr.bf16.mxu1 %v4894_v55  ;;  %1736 = vmatpush1.bf16.msra.mxu0 %v4901_v62 }
  0xc1   : > { %1737 = vmatprep.subr.bf16.mxu0 %v4909_v0  ;;  %v6157_v54 = vshrl.u32 %v627_v53, 7  ;;  %v4998_v53 = vld [vmem:[%s6917_s8 + $0xe4] ss:$28 sps:$4 sm:$0xff]  }
  0xc3   : > { %1894 = vmatpush1.bf16.msra.mxu1 %v4892_v57  ;;  %v6160_v55 = vsub.s32 0, %v6157_v54  ;;  %v6166_v57 = vsub.s32 1, %v6157_v54 }
  0xc4   : > { %1895 = vmatprep.subr.bf16.mxu1 %v4900_v59  ;;  %1738 = vmatpush1.bf16.msra.mxu0 %v4907_v3 }
  0xc5   : > { %1739 = vmatprep.subr.bf16.mxu0 %v4915_v5  ;;  %v630_v58 = vrot.slane %v625_v56, %v6160_v55  ;;  %v634_v59 = vrot.slane %v625_v56, %v6166_v57 }
  0xc7   : > { %1896 = vmatpush1.bf16.msra.mxu1 %v4898_v61 }
  0xc8   : > { %1897 = vmatprep.subr.bf16.mxu1 %v4906_v63  ;;  %1740 = vmatpush1.bf16.msra.mxu0 %v4913_v7 }
  0xc9   : > { %1741 = vmatprep.subr.bf16.mxu0 %v4921_v9  ;;  %v6171_v9 = vsub.s32 2, %v6157_v54 }
  0xcb   : > { %1898 = vmatpush1.bf16.msra.mxu1 %v4904_v1 }
  0xcc   : > { %1899 = vmatprep.subr.bf16.mxu1 %v4912_v4  ;;  %1742 = vmatpush1.bf16.msra.mxu0 %v4919_v11  ;;  %v638_v11 = vrot.slane %v625_v56, %v6171_v9 }
  0xcd   : > { %1743 = vmatprep.subr.bf16.mxu0 %v4927_v14 }
  0xcf   : > { %1900 = vmatpush1.bf16.msra.mxu1 %v4910_v6 }
  0xd0   : > { %1901 = vmatprep.subr.bf16.mxu1 %v4918_v8  ;;  %1744 = vmatpush1.bf16.msra.mxu0 %v4925_v16 }
  0xd1   : > { %4506 = vmatprep.subr.bf16.mxu0 %v4937_v19 }
  0xd3   : > { %1902 = vmatpush1.bf16.msra.mxu1 %v4916_v10  ;;  %1746 = vmatmul.mubr.bf16.vlgmr.msra.gmra.mrb[0].mxu0 %v426_v22  ;;  %v6174_v10 = vsub.s32 3, %v6157_v54 }
  0xd4   : > { %1903 = vmatprep.subr.bf16.mxu1 %v4924_v13  ;;  %4507 = vmatpush3.bf16.msra.mxu0 %v4938_v21 }
  0xd5   : > { %4508 = vmatprep.subr.bf16.mxu0 %v4939_v24  ;;  %v642_v13 = vrot.slane %v625_v56, %v6174_v10  ;;  %v4962_v24 = vld [vmem:[%s6915_s6] ss:$16 sps:$4 sm:$0xff]  }
  0xd6   : > { %v4996_v56 = vld [vmem:[%s6917_s8 + $0xe0] ss:$28 sps:$4 sm:$0xff]  }
  0xd7   : > { %1904 = vmatpush1.bf16.msra.mxu1 %v4922_v15 }
  0xd8   : > { %1905 = vmatprep.subr.bf16.mxu1 %v4930_v18  ;;  %4509 = vmatpush3.bf16.msra.mxu0 %v4940_v26 }
  0xd9   : > { %4510 = vmatprep.subr.bf16.mxu0 %v4941_v28 }
  0xdb   : > { %1906 = vmatpush1.bf16.msra.mxu1 %v4928_v20 }
  0xdc   : > { %1907 = vmatprep.subr.bf16.mxu1 %v4933_v23  ;;  %4511 = vmatpush3.bf16.msra.mxu0 %v4942_v30 }
  0xdd   : > { %4512 = vmatprep.subr.bf16.mxu0 %v4943_v31  ;;  %v4283_v31 = vld [vmem:[%s6914_s5] ss:$0 sm:$0xff] }
  0xdf   : > { %1908 = vmatpush1.bf16.msra.mxu1 %v4931_v25  ;;  %v4964_v25 = vld [vmem:[%s6915_s6 + $0x4] ss:$16 sps:$4 sm:$0xff]  }
  0xe0   : > { %1918 = vmatprep.subr.bf16.mxu1 %v4936_v27  ;;  %4513 = vmatpush3.bf16.msra.mxu0 %v4944_v32 }
  0xe1   : > { %4514 = vmatprep.subr.bf16.mxu0 %v4946_v33 }
  0xe2   : > { %1910 = vmatmul.mubr.bf16.vlgmr.msra.gmra.mrb[4].mxu1 %v426_v22 }
  0xe3   : > { %1919 = vmatpush1.bf16.msra.mxu1 %v4934_v29  ;;  %1950 = vmatprep.mubr.bf16.mxu1 %v5348_v2 }
  0xe4   : > { %2217 = vmatprep.subr.bf16.mxu1 %v5348_v2  ;;  %4515 = vmatpush3.bf16.msra.mxu0 %v4947_v34 }
  0xe5   : > { %4516 = vmatprep.subr.bf16.mxu0 %v4949_v35 }
  0xe8   : > { %4517 = vmatpush3.bf16.msra.mxu0 %v4950_v42 }
  0xee   : > { %4282 = vmatmul.mubr.msk.bf16.vlgmr.msra.gmra.mrb[4].mxu1 %vm1627_vm0, %v5502_v12  ;;  %v4952_v12 = vld [vmem:[%s6913_s4 + $0x70] sm:$0xff]  }
  0xef   : > { %2218 = vmatpush1.bf16.msra.mxu1 %v4945_v36  ;;  %4518 = vmatprep.subr.bf16.mxu0 %v4952_v12  ;;  %v4969_v12 = vld [vmem:[%s6915_s6 + $0xc] ss:$16 sps:$4 sm:$0xff]  }
  0xf0   : > { %2219 = vmatprep.subr.bf16.mxu1 %v5348_v2  ;;  %4519 = vmatpush3.bf16.msra.mxu0 %v4953_v44 }
  0xf1   : > { %4520 = vmatprep.subr.bf16.mxu0 %v4955_v46  ;;  %v4974_v46 = vld [vmem:[%s6917_s8 + $0x4] ss:$28 sps:$4 sm:$0xff]  }
  0xf3   : > { %2220 = vmatpush1.bf16.msra.mxu1 %v4948_v37 }
  0xf4   : > { %2221 = vmatprep.subr.bf16.mxu1 %v5348_v2  ;;  %4521 = vmatpush3.bf16.msra.mxu0 %v4956_v47  ;;  %v4980_v47 = vld [vmem:[%s6917_s8 + $0x3c] ss:$28 sps:$4 sm:$0xff]  }
  0xf5   : > { %v1788_v38 = vpop.f32.mrb[0].mxu1  ;;  %3572 = vmatprep.subr.bf16.mxu0 %v4974_v46  ;;  %v5035_v46 = vld [vmem:[%s6917_s8 + $0x238] ss:$28 sps:$4 sm:$0xff]  }
  0xf6   : > { %v1790_v39 = vpop.f32.mrb[1].mxu1 }
  0xf7   : > { %v1792_v40 = vpop.f32.mrb[2].mxu1  ;;  %2222 = vmatpush1.bf16.msra.mxu1 %v4951_v43 }
  0xf8   : > { %v1793_v41 = vpop.f32.mrb[3].mxu1  ;;  %2223 = vmatprep.subr.bf16.mxu1 %v5348_v2 }
  0xfb   : > { %2224 = vmatpush1.bf16.msra.mxu1 %v4954_v45  ;;  %v4972_v45 = vld [vmem:[%s6917_s8] ss:$28 sps:$4 sm:$0xff]  }
  0xfc   : > { %2225 = vmatprep.subr.bf16.mxu1 %v5348_v2 }
  0xff   : > { %2226 = vmatpush1.bf16.msra.mxu1 %v4957_v48  ;;  %v4978_v48 = vld [vmem:[%s6917_s8 + $0x38] ss:$28 sps:$4 sm:$0xff]  }
 0x100   : > { %2227 = vmatprep.subr.bf16.mxu1 %v5348_v2 }
 0x103   : > { %2228 = vmatpush1.bf16.msra.mxu1 %v4958_v49  ;;  %v4986_v49 = vld [vmem:[%s6917_s8 + $0x74] ss:$28 sps:$4 sm:$0xff]  }
 0x104   : > { %2229 = vmatprep.subr.bf16.mxu1 %v5348_v2 }
 0x107   : > { %2230 = vmatpush1.bf16.msra.mxu1 %v4959_v50  ;;  %v4984_v50 = vld [vmem:[%s6917_s8 + $0x70] ss:$28 sps:$4 sm:$0xff]  }
 0x108   : > { %2231 = vmatprep.subr.bf16.mxu1 %v5348_v2 }
 0x10b   : > { %2232 = vmatpush1.bf16.msra.mxu1 %v4960_v51  ;;  %v4992_v51 = vld [vmem:[%s6917_s8 + $0xac] ss:$28 sps:$4 sm:$0xff]  }
 0x10c   : > { %2233 = vmatprep.subr.bf16.mxu1 %v5348_v2 }
 0x10f   : > { %2234 = vmatpush1.bf16.msra.mxu1 %v4961_v52  ;;  %v4990_v52 = vld [vmem:[%s6917_s8 + $0xa8] ss:$28 sps:$4 sm:$0xff]  }
 0x110   : > { %2342 = vmatprep.subr.bf16.mxu1 %v4964_v25 }
 0x1a6   : > { %v1747_v60 = vpop.f32.mrb[0].mxu0 }
 0x1a7   : > { %v4550_v61 = vadd.f32 %v1747_v60, %v630_v58  ;;  %v1749_v62 = vpop.f32.mrb[1].mxu0  ;;  %v5004_v58 = vld [vmem:[%s6917_s8 + $0x11c] ss:$28 sps:$4 sm:$0xff]   ;;  %v5010_v60 = vld [vmem:[%s6917_s8 + $0x154] ss:$28 sps:$4 sm:$0xff]  }
 0x1a8   : > { %v4552_v63 = vadd.f32 %v1749_v62, %v634_v59  ;;  %v1751_v0 = vpop.f32.mrb[2].mxu0  ;;  %v5002_v59 = vld [vmem:[%s6917_s8 + $0x118] ss:$28 sps:$4 sm:$0xff]   ;;  %v5016_v62 = vld [vmem:[%s6917_s8 + $0x18c] ss:$28 sps:$4 sm:$0xff]  }
 0x1a9   : > { %v4551_v1 = vadd.f32 %v4550_v61, %v1788_v38  ;;  %v1752_v3 = vpop.f32.mrb[3].mxu0  ;;  %v5008_v61 = vld [vmem:[%s6917_s8 + $0x150] ss:$28 sps:$4 sm:$0xff]   ;;  %v5022_v0 = vld [vmem:[%s6917_s8 + $0x1c4] ss:$28 sps:$4 sm:$0xff]  }
 0x1aa   : > { %v4553_v4 = vadd.f32 %v4552_v63, %v1790_v39  ;;  %v2271_v39 = vld [vmem:[%s6915_s6 + $0x20] sm:$0x33]  ;;  %v5028_v3 = vld [vmem:[%s6917_s8 + $0x1fc] ss:$28 sps:$4 sm:$0xff]  }
 0x1ab   : > { %v1959_v5 = vmax.f32 %v4551_v1, 0.0  ;;  %v4315_v41 = vcombine.high %v2271_v39, %v2271_v39  ;;  %v4314_v42 = vcombine.low %v2271_v39, %v2271_v39  ;;  %v5014_v63 = vld [vmem:[%s6917_s8 + $0x188] ss:$28 sps:$4 sm:$0xff]   ;;  %v5020_v1 = vld [vmem:[%s6917_s8 + $0x1c0] ss:$28 sps:$4 sm:$0xff]  }
 0x1ac   : > { %v1960_v6 = vmax.f32 %v4553_v4, 0.0  ;;  %v5026_v4 = vld [vmem:[%s6917_s8 + $0x1f8] ss:$28 sps:$4 sm:$0xff]  }
 0x1ad   : > { %v1963_v8 = vpack.c.bf16 %v1959_v5, %v1959_v5  ;;  %v2331_v43 = vsel %vm2329_vm2, %v4314_v42, 0  ;;  %v5034_v5 = vld [vmem:[%s6917_s8 + $0x234] ss:$28 sps:$4 sm:$0xff]   ;;  %v5025_v42 = vld [vmem:[%s6917_s8 + $0x1cc] ss:$28 sps:$4 sm:$0xff]  }
 0x1ae   : > { %v1964_v7 = vpack.c.bf16 %v1960_v6, %v1960_v6  ;;  %v5032_v6 = vld [vmem:[%s6917_s8 + $0x230] ss:$28 sps:$4 sm:$0xff]   ;;  %v5011_v39 = vld [vmem:[%s6917_s8 + $0x158] ss:$28 sps:$4 sm:$0xff]  }
 0x1b0   : > { %2209 = vmatprep.mubr.bf16.mxu0 %v1964_v7  ;;  %v5040_v7 = vld [vmem:[%s6917_s8 + $0x26c] ss:$28 sps:$4 sm:$0xff]  }
 0x1b1   : > { %2210 = vmatmul.mubr.bf16.vlgmr.msra.gmra.mrb[4].mxu0 %v1963_v8  ;;  %v5038_v8 = vld [vmem:[%s6917_s8 + $0x268] ss:$28 sps:$4 sm:$0xff]  }
 0x1b2   : > { %3573 = vmatpush1.bf16.msra.mxu0 %v4972_v45  ;;  %v5037_v45 = vld [vmem:[%s6917_s8 + $0x23c] ss:$28 sps:$4 sm:$0xff]  }
 0x1b3   : > { %3574 = vmatprep.subr.bf16.mxu0 %v4980_v47  ;;  %v5043_v47 = vld [vmem:[%s6917_s8 + $0x274] ss:$28 sps:$4 sm:$0xff]  }
 0x1b6   : > { %3575 = vmatpush1.bf16.msra.mxu0 %v4978_v48  ;;  %v5041_v48 = vld [vmem:[%s6917_s8 + $0x270] ss:$28 sps:$4 sm:$0xff]  }
 0x1b7   : > { %3576 = vmatprep.subr.bf16.mxu0 %v4986_v49  ;;  %v5049_v49 = vld [vmem:[%s6917_s8 + $0x2ac] ss:$28 sps:$4 sm:$0xff]  }
 0x1ba   : > { %3577 = vmatpush1.bf16.msra.mxu0 %v4984_v50  ;;  %v5047_v50 = vld [vmem:[%s6917_s8 + $0x2a8] ss:$28 sps:$4 sm:$0xff]  }
 0x1bb   : > { %3578 = vmatprep.subr.bf16.mxu0 %v4992_v51  ;;  %v5055_v51 = vld [vmem:[%s6917_s8 + $0x2e4] ss:$28 sps:$4 sm:$0xff]  }
 0x1be   : > { %3579 = vmatpush1.bf16.msra.mxu0 %v4990_v52  ;;  %v5053_v52 = vld [vmem:[%s6917_s8 + $0x2e0] ss:$28 sps:$4 sm:$0xff]  }
 0x1bf   : > { %3580 = vmatprep.subr.bf16.mxu0 %v4998_v53  ;;  %v5058_v53 = vld [vmem:[%s6917_s8 + $0x314] ss:$28 sps:$4 sm:$0xff]  }
 0x1c1   : > { %v1952_v14 = vpop.f32.mrb[4].mxu1 }
 0x1c2   : > { %v4554_v15 = vadd.f32 %v1952_v14, %v638_v11  ;;  %v1954_v16 = vpop.f32.mrb[5].mxu1  ;;  %3581 = vmatpush1.bf16.msra.mxu0 %v4996_v56  ;;  %v5046_v11 = vld [vmem:[%s6917_s8 + $0x2a4] ss:$28 sps:$4 sm:$0xff]   ;;  %v5052_v14 = vld [vmem:[%s6917_s8 + $0x2dc] ss:$28 sps:$4 sm:$0xff]  }
 0x1c3   : > { %v4555_v17 = vadd.f32 %v1954_v16, %v642_v13  ;;  %v1956_v18 = vpop.f32.mrb[6].mxu1  ;;  %3582 = vmatprep.subr.bf16.mxu0 %v5004_v58  ;;  %v5044_v13 = vld [vmem:[%s6917_s8 + $0x2a0] ss:$28 sps:$4 sm:$0xff]   ;;  %v5056_v58 = vld [vmem:[%s6917_s8 + $0x310] ss:$28 sps:$4 sm:$0xff]  }
 0x1c4   : > { %v1961_v19 = vmax.f32 %v4554_v15, 0.0  ;;  %v1957_v20 = vpop.f32.mrb[7].mxu1  ;;  %v5050_v15 = vld [vmem:[%s6917_s8 + $0x2d8] ss:$28 sps:$4 sm:$0xff]  }
 0x1c5   : > { %v1962_v21 = vmax.f32 %v4555_v17, 0.0  ;;  %v5061_v56 = vld [vmem:[%s6917_s8 + $0x31c] ss:$28 sps:$4 sm:$0xff]  }
 0x1c6   : > { %v1965_v23 = vpack.c.bf16 %v1961_v19, %v1961_v19  ;;  %3583 = vmatpush1.bf16.msra.mxu0 %v5002_v59  ;;  %v2272_v19 = vld [vmem:[%s6915_s6 + $0x28] sm:$0x33]  ;;  %v5059_v59 = vld [vmem:[%s6917_s8 + $0x318] ss:$28 sps:$4 sm:$0xff]  }
 0x1c7   : > { %v1966_v22 = vpack.c.bf16 %v1962_v21, %v1962_v21  ;;  %3584 = vmatprep.subr.bf16.mxu0 %v5010_v60  ;;  %v4967_v21 = vld [vmem:[%s6915_s6 + $0x8] ss:$16 sps:$4 sm:$0xff]  }
 0x1c8   : > { %v5064_v60 = vld [vmem:[%s6917_s8 + $0x34c] ss:$28 sps:$4 sm:$0xff]  }
 0x1c9   : > { %4309 = vmatprep.mubr.msk.bf16.mxu1 %vm1627_vm0, %v1966_v22 }
 0x1ca   : > { %2250 = vmatmul.mubr.bf16.vlgmr.msra.gmra.mrb[8].mxu1 %v1965_v23  ;;  %3585 = vmatpush1.bf16.msra.mxu0 %v5008_v61  ;;  %v4317_v23 = vcombine.high %v2272_v19, %v2272_v19  ;;  %v5067_v61 = vld [vmem:[%s6917_s8 + $0x354] ss:$28 sps:$4 sm:$0xff]  }
 0x1cb   : > { %2374 = vmatprep.mubr.bf16.mxu1 %v5348_v2  ;;  %2343 = vmatpush1.bf16.msra.mxu1 %v4962_v24  ;;  %v4316_v24 = vcombine.low %v2272_v19, %v2272_v19  ;;  %v5071_v19 = vld [vmem:[%s6917_s8 + $0x388] ss:$28 sps:$4 sm:$0xff]  }
 0x1cc   : > { %4318 = vmatprep.subr.msk.bf16.mxu1 %vm2329_vm2, %v4315_v41  ;;  %3586 = vmatprep.subr.bf16.mxu0 %v5016_v62  ;;  %v5017_v41 = vld [vmem:[%s6917_s8 + $0x190] ss:$28 sps:$4 sm:$0xff]   ;;  %v5062_v62 = vld [vmem:[%s6917_s8 + $0x348] ss:$28 sps:$4 sm:$0xff]  }
 0x1cd   : > { %v2337_v25 = vsel %vm2329_vm2, %v4316_v24, 0 }
 0x1ce   : > { %3587 = vmatpush1.bf16.msra.mxu0 %v5014_v63  ;;  %v5065_v63 = vld [vmem:[%s6917_s8 + $0x350] ss:$28 sps:$4 sm:$0xff]  }
 0x1cf   : > { %2345 = vmatpush1.bf16.msra.mxu1 %v2331_v43  ;;  %3588 = vmatprep.subr.bf16.mxu0 %v5022_v0  ;;  %v5023_v43 = vld [vmem:[%s6917_s8 + $0x1c8] ss:$28 sps:$4 sm:$0xff]  }
 0x1d0   : > { %2383 = vmatprep.subr.bf16.mxu1 %v4969_v12  ;;  %v5031_v12 = vld [vmem:[%s6917_s8 + $0x204] ss:$28 sps:$4 sm:$0xff]  }
 0x1d1   : > { %v5070_v0 = vld [vmem:[%s6917_s8 + $0x384] ss:$28 sps:$4 sm:$0xff]  }
 0x1d2   : > { %3589 = vmatpush1.bf16.msra.mxu0 %v5020_v1  ;;  %v5073_v1 = vld [vmem:[%s6917_s8 + $0x38c] ss:$28 sps:$4 sm:$0xff]  }
 0x1d3   : > { %3590 = vmatprep.subr.bf16.mxu0 %v5028_v3  ;;  %v6423_v3 = vld [vmem:[%s6916_s7] sm:$0xf] }
 0x1d6   : > { %3591 = vmatpush1.bf16.msra.mxu0 %v5026_v4  ;;  %v2278_v4 = vrot.slane %v6423_v3, %v6160_v55 }
 0x1d7   : > { %3592 = vmatprep.subr.bf16.mxu0 %v5034_v5  ;;  %v2282_v5 = vrot.slane %v6423_v3, %v6166_v57 }
 0x1da   : > { %3593 = vmatpush1.bf16.msra.mxu0 %v5032_v6 }
 0x1db   : > { %3594 = vmatprep.subr.bf16.mxu0 %v5040_v7 }
 0x1de   : > { %3595 = vmatpush1.bf16.msra.mxu0 %v5038_v8 }
 0x1df   : > { %3596 = vmatprep.subr.bf16.mxu0 %v5046_v11 }
 0x1e2   : > { %3597 = vmatpush1.bf16.msra.mxu0 %v5044_v13 }
 0x1e3   : > { %3598 = vmatprep.subr.bf16.mxu0 %v5052_v14 }
 0x1e6   : > { %3599 = vmatpush1.bf16.msra.mxu0 %v5050_v15 }
 0x1e7   : > { %3600 = vmatprep.subr.bf16.mxu0 %v5058_v53  ;;  %v5112_v53 = vld [vmem:[%s6917_s8 + $0x50c] ss:$28 sps:$4 sm:$0xff]  }
 0x1ea   : > { %3601 = vmatpush1.bf16.msra.mxu0 %v5056_v58  ;;  %v5110_v58 = vld [vmem:[%s6917_s8 + $0x508] ss:$28 sps:$4 sm:$0xff]  }
 0x1eb   : > { %3602 = vmatprep.subr.bf16.mxu0 %v5064_v60 }
 0x1ee   : > { %3603 = vmatpush1.bf16.msra.mxu0 %v5062_v62  ;;  %v5121_v62 = vld [vmem:[%s6917_s8 + $0x54c] ss:$28 sps:$4 sm:$0xff]  }
 0x1ef   : > { %3613 = vmatprep.subr.bf16.mxu0 %v5070_v0  ;;  %v5119_v0 = vld [vmem:[%s6917_s8 + $0x548] ss:$28 sps:$4 sm:$0xff]  }
 0x284   : > { %v4522_v26 = vpop.f32.mrb[4].mxu0 }
 0x285   : > { %v4523_v27 = vpop.f32.mrb[5].mxu0 }
 0x286   : > { %v4524_v28 = vadd.f32 %v4523_v27, %v4522_v26  ;;  %v4525_v29 = vpop.f32.mrb[6].mxu0  ;;  %v4977_v26 = vld [vmem:[%s6917_s8 + $0xc] ss:$28 sps:$4 sm:$0xff]  }
 0x287   : > { %v4526_v30 = vpop.f32.mrb[7].mxu0  ;;  %v4975_v27 = vld [vmem:[%s6917_s8 + $0x8] ss:$28 sps:$4 sm:$0xff]   ;;  %v4981_v29 = vld [vmem:[%s6917_s8 + $0x40] ss:$28 sps:$4 sm:$0xff]  }
 0x288   : > { %v2212_v32 = vadd.f32 %v4524_v28, %v4283_v31  ;;  %v4983_v28 = vld [vmem:[%s6917_s8 + $0x44] ss:$28 sps:$4 sm:$0xff]   ;;  %v4989_v30 = vld [vmem:[%s6917_s8 + $0x7c] ss:$28 sps:$4 sm:$0xff]  }
 0x289   : > { %v4987_v31 = vld [vmem:[%s6917_s8 + $0x78] ss:$28 sps:$4 sm:$0xff]  }
 0x29d   : > { %v2251_v33 = vpop.f32.mrb[8].mxu1 }
 0x29e   : > { %v6193_v34 = vadd.f32 %v2251_v33, %v2212_v32  ;;  %v2253_v35 = vpop.f32.mrb[9].mxu1  ;;  %v4995_v32 = vld [vmem:[%s6917_s8 + $0xb4] ss:$28 sps:$4 sm:$0xff]  }
 0x29f   : > { %v2254_v36 = vpop.f32.mrb[10].mxu1  ;;  %v4993_v33 = vld [vmem:[%s6917_s8 + $0xb0] ss:$28 sps:$4 sm:$0xff]   ;;  %v4999_v35 = vld [vmem:[%s6917_s8 + $0xe8] ss:$28 sps:$4 sm:$0xff]  }
 0x2a0   : > { %v2257_v37 = vmul.f32 0.5, %v6193_v34  ;;  %v2255_v38 = vpop.f32.mrb[11].mxu1  ;;  %3941 = vst.msk [vmem:[%s6196_s29] sm:$0xff] %vm3940_vm1, %v6193_v34  ;;  %v5007_v36 = vld [vmem:[%s6917_s8 + $0x124] ss:$28 sps:$4 sm:$0xff]   ;;  %s5256_s29 = sshll.u32 %s5350_s13, 4  ;;  %s5257_s29 = int_to_ptr.vmem [resolvable:$false] %s5256_s29 }
 0x2a1   : > { %v5013_v38 = vld [vmem:[%s6917_s8 + $0x15c] ss:$28 sps:$4 sm:$0xff]   ;;  %s5258_s16 = scalar_lea.vmem %s5257_s29, 256  ;;  %p5259_p0 = scmp.lt.s32.totalorder %s6820_s25, %s5257_s29 }
 0x2a2   : > { %v2258_v40 = vmul.f32 1.442695, %v2257_v37  ;;  %v5005_v37 = vld [vmem:[%s6917_s8 + $0x120] ss:$28 sps:$4 sm:$0xff]   ;;  %p5260_p1 = scmp.lt.s32.totalorder %s5258_s16, %s5252_s19 }
 0x2a4   : > { %5222 = vpow2.f32 %v2258_v40  ;;  %v5019_v40 = vld [vmem:[%s6917_s8 + $0x194] ss:$28 sps:$4 sm:$0xff]   ;;  %p5261_p2 = por %p5260_p1, %p5259_p0 }
 0x2a6   : > { %p5262_p3 = pnand %p5261_p2, %p5255_p13 }
 0x2ae   : > { %v5223_v44 = vpop.eup %5222 }
 0x2af   : > { %2261 = vrot.lane.b32.xlu0 %v5223_v44, %s5349_s15  ;;  %s412_s15 = scalar_lea.vmem %s6910_s1, %s4084_s12  ;;  %v5029_v44 = vld [vmem:[%s6917_s8 + $0x200] ss:$28 sps:$4 sm:$0xff]  }
 0x2b0   : > { %v421_v16 = vld [vmem:[%s412_s15] sm:$0xff]  ;;  %s3948_s15 = scalar_lea.sflag [#allocation5], %s6187_s26 }
 0x321   : > { %v2262_v17 = vpop.permute.xlu0 %2261 }
 0x322   : > { %v2264_v18 = vmul.f32 %v2262_v17, %v421_v16 }
 0x324   : > { %v2265_v20 = vadd.f32 %v2264_v18, %v6193_v34  ;;  %v5001_v34 = vld [vmem:[%s6917_s8 + $0xec] ss:$28 sps:$4 sm:$0xff]   ;;  %v5068_v18 = vld [vmem:[%s6917_s8 + $0x380] ss:$28 sps:$4 sm:$0xff]  }
 0x326   : > { %v2266_v22 = vpack.c.bf16 %v2265_v20, %v2265_v20  ;;  %v2290_v20 = vrot.slane %v6423_v3, %v6174_v10 }
 0x328   : > { %4319 = vmatmul.mubr.msk.bf16.vlgmr.msra.gmra.mrb[12].mxu1 %vm2325_vm3, %v2266_v22 }
 0x329   : > { %2384 = vmatpush1.bf16.msra.mxu1 %v4967_v21  ;;  %2415 = vmatprep.mubr.bf16.mxu1 %v5348_v2 }
 0x32a   : > { %4320 = vmatprep.subr.msk.bf16.mxu1 %vm2329_vm2, %v4317_v23  ;;  %v5079_v23 = vld [vmem:[%s6917_s8 + $0x3c4] ss:$28 sps:$4 sm:$0xff]  }
 0x32d   : > { %2386 = vmatpush1.bf16.msra.mxu1 %v2337_v25 }
 0x32e   : > { %3654 = vmatprep.subr.bf16.mxu1 %v4977_v26 }
 0x330   : > { %4321 = vmatmul.mubr.msk.bf16.vlgmr.msra.gmra.mrb[16].mxu1 %vm2325_vm3, %v2266_v22  ;;  %v5076_v22 = vld [vmem:[%s6917_s8 + $0x3bc] ss:$28 sps:$4 sm:$0xff]  }
 0x331   : > { %3655 = vmatpush1.bf16.msra.mxu1 %v4975_v27 }
 0x332   : > { %3656 = vmatprep.subr.bf16.mxu1 %v4983_v28  ;;  %v5074_v28 = vld [vmem:[%s6917_s8 + $0x3b8] ss:$28 sps:$4 sm:$0xff]  }
 0x335   : > { %3657 = vmatpush1.bf16.msra.mxu1 %v4981_v29  ;;  %v5077_v29 = vld [vmem:[%s6917_s8 + $0x3c0] ss:$28 sps:$4 sm:$0xff]  }
 0x336   : > { %3658 = vmatprep.subr.bf16.mxu1 %v4989_v30 }
 0x339   : > { %3659 = vmatpush1.bf16.msra.mxu1 %v4987_v31  ;;  %v5082_v31 = vld [vmem:[%s6917_s8 + $0x3f4] ss:$28 sps:$4 sm:$0xff]  }
 0x33a   : > { %3660 = vmatprep.subr.bf16.mxu1 %v4995_v32  ;;  %v5085_v32 = vld [vmem:[%s6917_s8 + $0x3fc] ss:$28 sps:$4 sm:$0xff]  }
 0x33d   : > { %3661 = vmatpush1.bf16.msra.mxu1 %v4993_v33 }
 0x33e   : > { %3662 = vmatprep.subr.bf16.mxu1 %v5001_v34 }
 0x341   : > { %3663 = vmatpush1.bf16.msra.mxu1 %v4999_v35  ;;  %v5080_v35 = vld [vmem:[%s6917_s8 + $0x3f0] ss:$28 sps:$4 sm:$0xff]  }
 0x342   : > { %3664 = vmatprep.subr.bf16.mxu1 %v5007_v36  ;;  %v5083_v36 = vld [vmem:[%s6917_s8 + $0x3f8] ss:$28 sps:$4 sm:$0xff]  }
 0x345   : > { %3665 = vmatpush1.bf16.msra.mxu1 %v5005_v37  ;;  %v5088_v37 = vld [vmem:[%s6917_s8 + $0x42c] ss:$28 sps:$4 sm:$0xff]  }
 0x346   : > { %3666 = vmatprep.subr.bf16.mxu1 %v5013_v38  ;;  %v5091_v38 = vld [vmem:[%s6917_s8 + $0x434] ss:$28 sps:$4 sm:$0xff]  }
 0x349   : > { %3667 = vmatpush1.bf16.msra.mxu1 %v5011_v39  ;;  %v5086_v39 = vld [vmem:[%s6917_s8 + $0x428] ss:$28 sps:$4 sm:$0xff]  }
 0x34a   : > { %3668 = vmatprep.subr.bf16.mxu1 %v5019_v40  ;;  %v5089_v40 = vld [vmem:[%s6917_s8 + $0x430] ss:$28 sps:$4 sm:$0xff]  }
 0x34d   : > { %3669 = vmatpush1.bf16.msra.mxu1 %v5017_v41  ;;  %v5094_v41 = vld [vmem:[%s6917_s8 + $0x464] ss:$28 sps:$4 sm:$0xff]  }
 0x34e   : > { %3670 = vmatprep.subr.bf16.mxu1 %v5025_v42  ;;  %v5097_v42 = vld [vmem:[%s6917_s8 + $0x46c] ss:$28 sps:$4 sm:$0xff]  }
 0x351   : > { %3671 = vmatpush1.bf16.msra.mxu1 %v5023_v43  ;;  %v5092_v43 = vld [vmem:[%s6917_s8 + $0x460] ss:$28 sps:$4 sm:$0xff]  }
 0x352   : > { %3672 = vmatprep.subr.bf16.mxu1 %v5031_v12  ;;  %v5095_v12 = vld [vmem:[%s6917_s8 + $0x468] ss:$28 sps:$4 sm:$0xff]  }
 0x355   : > { %3673 = vmatpush1.bf16.msra.mxu1 %v5029_v44  ;;  %v5100_v44 = vld [vmem:[%s6917_s8 + $0x49c] ss:$28 sps:$4 sm:$0xff]  }
 0x356   : > { %3674 = vmatprep.subr.bf16.mxu1 %v5037_v45  ;;  %v5103_v45 = vld [vmem:[%s6917_s8 + $0x4a4] ss:$28 sps:$4 sm:$0xff]  }
 0x359   : > { %3675 = vmatpush1.bf16.msra.mxu1 %v5035_v46  ;;  %v5098_v46 = vld [vmem:[%s6917_s8 + $0x498] ss:$28 sps:$4 sm:$0xff]  }
 0x35a   : > { %3676 = vmatprep.subr.bf16.mxu1 %v5043_v47  ;;  %v5101_v47 = vld [vmem:[%s6917_s8 + $0x4a0] ss:$28 sps:$4 sm:$0xff]  }
 0x35d   : > { %3677 = vmatpush1.bf16.msra.mxu1 %v5041_v48  ;;  %v5106_v48 = vld [vmem:[%s6917_s8 + $0x4d4] ss:$28 sps:$4 sm:$0xff]  }
 0x35e   : > { %3678 = vmatprep.subr.bf16.mxu1 %v5049_v49  ;;  %v5109_v49 = vld [vmem:[%s6917_s8 + $0x4dc] ss:$28 sps:$4 sm:$0xff]  }
 0x361   : > { %3679 = vmatpush1.bf16.msra.mxu1 %v5047_v50  ;;  %v5104_v50 = vld [vmem:[%s6917_s8 + $0x4d0] ss:$28 sps:$4 sm:$0xff]  }
 0x362   : > { %3680 = vmatprep.subr.bf16.mxu1 %v5055_v51  ;;  %v5107_v51 = vld [vmem:[%s6917_s8 + $0x4d8] ss:$28 sps:$4 sm:$0xff]  }
 0x365   : > { %3681 = vmatpush1.bf16.msra.mxu1 %v5053_v52  ;;  %v2286_v52 = vrot.slane %v6423_v3, %v6171_v9  ;;  %v5124_v3 = vld [vmem:[%s6917_s8 + $0x14] ss:$28 sps:$4 sm:$0xff]  }
 0x366   : > { %3682 = vmatprep.subr.bf16.mxu1 %v5061_v56  ;;  %v5115_v56 = vld [vmem:[%s6917_s8 + $0x514] ss:$28 sps:$4 sm:$0xff]  }
 0x369   : > { %3683 = vmatpush1.bf16.msra.mxu1 %v5059_v59  ;;  %v5113_v59 = vld [vmem:[%s6917_s8 + $0x510] ss:$28 sps:$4 sm:$0xff]  }
 0x36a   : > { %3684 = vmatprep.subr.bf16.mxu1 %v5067_v61  ;;  %v5118_v61 = vld [vmem:[%s6917_s8 + $0x544] ss:$28 sps:$4 sm:$0xff]  }
 0x36d   : > { %3685 = vmatpush1.bf16.msra.mxu1 %v5065_v63  ;;  %v5116_v63 = vld [vmem:[%s6917_s8 + $0x540] ss:$28 sps:$4 sm:$0xff]  }
 0x36e   : > { %3695 = vmatprep.subr.bf16.mxu1 %v5073_v1 }
 0x3fb   : > { %v2376_v6 = vpop.f32.mrb[12].mxu1 }
 0x3fc   : > { %v2377_v7 = vadd.f32 %v2376_v6, %v2278_v4  ;;  %v2378_v8 = vpop.f32.mrb[13].mxu1  ;;  %v5125_v4 = vld [vmem:[%s6917_s8 + $0x1d8] ss:$28 sps:$4 sm:$0xff]  }
 0x3fd   : > { %v2379_v11 = vadd.f32 %v2378_v8, %v2282_v5  ;;  %v2380_v13 = vpop.f32.mrb[14].mxu1  ;;  %v5122_v5 = vld [vmem:[%s6917_s8 + $0x10] ss:$28 sps:$4 sm:$0xff]  }
 0x3fe   : > { %v2424_v14 = vmax.f32 %v2377_v7, 0.0  ;;  %v2381_v15 = vpop.f32.mrb[15].mxu1  ;;  %v5126_v7 = vld [vmem:[%s6917_s8 + $0x18] ss:$28 sps:$4 sm:$0xff]   ;;  %v5129_v8 = vld [vmem:[%s6917_s8 + $0x4c] ss:$28 sps:$4 sm:$0xff]  }
 0x3ff   : > { %v2425_v16 = vmax.f32 %v2379_v11, 0.0  ;;  %v5130_v11 = vld [vmem:[%s6917_s8 + $0x210] ss:$28 sps:$4 sm:$0xff]   ;;  %v5127_v13 = vld [vmem:[%s6917_s8 + $0x48] ss:$28 sps:$4 sm:$0xff]  }
 0x400   : > { %v6439_v21 = vpack.c.bf16 %v2424_v14, %v2424_v14  ;;  %v5131_v14 = vld [vmem:[%s6917_s8 + $0x50] ss:$28 sps:$4 sm:$0xff]   ;;  %v5134_v15 = vld [vmem:[%s6917_s8 + $0x84] ss:$28 sps:$4 sm:$0xff]  }
 0x401   : > { %v6429_v17 = vpack.c.bf16 %v2425_v16, %v2425_v16  ;;  %v5135_v16 = vld [vmem:[%s6917_s8 + $0x248] ss:$28 sps:$4 sm:$0xff]  }
 0x403   : > { %v6447_v24 = vpop.f32.mrb[16].mxu1  ;;  %3604 = vmatprep.mubr.bf16.mxu0 %v6429_v17  ;;  %3686 = vmatprep.mubr.bf16.mxu1 %v6429_v17 }
 0x404   : > { %v2419_v25 = vpop.f32.mrb[17].mxu1  ;;  %3605 = vmatmul.mubr.bf16.vlgmr.msra.gmra.mrb[8].mxu0 %v6439_v21  ;;  %3687 = vmatmul.mubr.bf16.vlgmr.msra.gmra.mrb[20].mxu1 %v6439_v21  ;;  %v2418_v60 = vadd.f32 %v6447_v24, %v2286_v52  ;;  %v5144_v24 = vld [vmem:[%s6917_s8 + $0xf4] ss:$28 sps:$4 sm:$0xff]  }
 0x405   : > { %v2420_v26 = vadd.f32 %v2419_v25, %v2290_v20  ;;  %3614 = vmatpush1.bf16.msra.mxu0 %v5068_v18  ;;  %3696 = vmatpush1.bf16.msra.mxu1 %v5071_v19  ;;  %v2421_v27 = vpop.f32.mrb[18].mxu1  ;;  %v5132_v18 = vld [vmem:[%s6917_s8 + $0x80] ss:$28 sps:$4 sm:$0xff]   ;;  %v5145_v25 = vld [vmem:[%s6917_s8 + $0x2b8] ss:$28 sps:$4 sm:$0xff]  }
 0x406   : > { %v2422_v30 = vpop.f32.mrb[19].mxu1  ;;  %3615 = vmatprep.subr.bf16.mxu0 %v5076_v22  ;;  %3697 = vmatprep.subr.bf16.mxu1 %v5079_v23  ;;  %v2426_v1 = vmax.f32 %v2418_v60, 0.0  ;;  %v5139_v19 = vld [vmem:[%s6917_s8 + $0xbc] ss:$28 sps:$4 sm:$0xff]   ;;  %v5180_v52 = vld [vmem:[%s6917_s8 + $0x2b4] ss:$28 sps:$4 sm:$0xff]  }
 0x407   : > { %v2427_v33 = vmax.f32 %v2420_v26, 0.0  ;;  %v5140_v20 = vld [vmem:[%s6917_s8 + $0x280] ss:$28 sps:$4 sm:$0xff]   ;;  %v5137_v22 = vld [vmem:[%s6917_s8 + $0xb8] ss:$28 sps:$4 sm:$0xff]  }
 0x408   : > { %v6561_v6 = vpack.c.bf16 %v2426_v1, %v2426_v1  ;;  %v5141_v23 = vld [vmem:[%s6917_s8 + $0xc0] ss:$28 sps:$4 sm:$0xff]   ;;  %v5142_v26 = vld [vmem:[%s6917_s8 + $0xf0] ss:$28 sps:$4 sm:$0xff]   ;;  %v5146_v27 = vld [vmem:[%s6917_s8 + $0xf8] ss:$28 sps:$4 sm:$0xff]  }
 0x409   : > { %v6465_v34 = vpack.c.bf16 %v2427_v33, %v2427_v33  ;;  %3616 = vmatpush1.bf16.msra.mxu0 %v5074_v28  ;;  %3698 = vmatpush1.bf16.msra.mxu1 %v5077_v29  ;;  %v5149_v28 = vld [vmem:[%s6917_s8 + $0x12c] ss:$28 sps:$4 sm:$0xff]   ;;  %v5190_v1 = vld [vmem:[%s6917_s8 + $0x358] ss:$28 sps:$4 sm:$0xff]  }
 0x40a   : > { %3617 = vmatprep.subr.bf16.mxu0 %v5082_v31  ;;  %3699 = vmatprep.subr.bf16.mxu1 %v5085_v32  ;;  %v5150_v29 = vld [vmem:[%s6917_s8 + $0x2f0] ss:$28 sps:$4 sm:$0xff]   ;;  %v5147_v30 = vld [vmem:[%s6917_s8 + $0x128] ss:$28 sps:$4 sm:$0xff]  }
 0x40b   : > { %4497 = vmatprep.mubr.msk.bf16.mxu0 %vm1627_vm0, %v6465_v34  ;;  %4498 = vmatprep.mubr.msk.bf16.mxu1 %vm1627_vm0, %v6465_v34  ;;  %v5151_v31 = vld [vmem:[%s6917_s8 + $0x130] ss:$28 sps:$4 sm:$0xff]   ;;  %v5154_v32 = vld [vmem:[%s6917_s8 + $0x164] ss:$28 sps:$4 sm:$0xff]  }
 0x40c   : > { %v5155_v33 = vld [vmem:[%s6917_s8 + $0x328] ss:$28 sps:$4 sm:$0xff]   ;;  %v5185_v60 = vld [vmem:[%s6917_s8 + $0x4b0] ss:$28 sps:$4 sm:$0xff]  }
 0x40d   : > { %3618 = vmatpush1.bf16.msra.mxu0 %v5080_v35  ;;  %3700 = vmatpush1.bf16.msra.mxu1 %v5083_v36  ;;  %v5152_v35 = vld [vmem:[%s6917_s8 + $0x160] ss:$28 sps:$4 sm:$0xff]   ;;  %v5156_v36 = vld [vmem:[%s6917_s8 + $0x168] ss:$28 sps:$4 sm:$0xff]  }
 0x40e   : > { %3619 = vmatprep.subr.bf16.mxu0 %v5088_v37  ;;  %3701 = vmatprep.subr.bf16.mxu1 %v5091_v38  ;;  %v5159_v37 = vld [vmem:[%s6917_s8 + $0x19c] ss:$28 sps:$4 sm:$0xff]  }
 0x40f   : > { %v5160_v38 = vld [vmem:[%s6917_s8 + $0x360] ss:$28 sps:$4 sm:$0xff]  }
 0x411   : > { %3620 = vmatpush1.bf16.msra.mxu0 %v5086_v39  ;;  %3702 = vmatpush1.bf16.msra.mxu1 %v5089_v40  ;;  %v5157_v39 = vld [vmem:[%s6917_s8 + $0x198] ss:$28 sps:$4 sm:$0xff]   ;;  %v5161_v40 = vld [vmem:[%s6917_s8 + $0x1a0] ss:$28 sps:$4 sm:$0xff]  }
 0x412   : > { %3621 = vmatprep.subr.bf16.mxu0 %v5094_v41  ;;  %3703 = vmatprep.subr.bf16.mxu1 %v5097_v42  ;;  %v5164_v41 = vld [vmem:[%s6917_s8 + $0x1d4] ss:$28 sps:$4 sm:$0xff]  }
 0x413   : > { %v5162_v42 = vld [vmem:[%s6917_s8 + $0x1d0] ss:$28 sps:$4 sm:$0xff]  }
 0x415   : > { %3622 = vmatpush1.bf16.msra.mxu0 %v5092_v43  ;;  %3704 = vmatpush1.bf16.msra.mxu1 %v5095_v12  ;;  %v5165_v43 = vld [vmem:[%s6917_s8 + $0x398] ss:$28 sps:$4 sm:$0xff]   ;;  %v5168_v12 = vld [vmem:[%s6917_s8 + $0x20c] ss:$28 sps:$4 sm:$0xff]  }
 0x416   : > { %3623 = vmatprep.subr.bf16.mxu0 %v5100_v44  ;;  %3705 = vmatprep.subr.bf16.mxu1 %v5103_v45  ;;  %v5166_v44 = vld [vmem:[%s6917_s8 + $0x208] ss:$28 sps:$4 sm:$0xff]   ;;  %v5169_v45 = vld [vmem:[%s6917_s8 + $0x3d0] ss:$28 sps:$4 sm:$0xff]  }
 0x419   : > { %3624 = vmatpush1.bf16.msra.mxu0 %v5098_v46  ;;  %3706 = vmatpush1.bf16.msra.mxu1 %v5101_v47  ;;  %v5172_v46 = vld [vmem:[%s6917_s8 + $0x244] ss:$28 sps:$4 sm:$0xff]  }
 0x41a   : > { %3625 = vmatprep.subr.bf16.mxu0 %v5106_v48  ;;  %3707 = vmatprep.subr.bf16.mxu1 %v5109_v49  ;;  %v5170_v47 = vld [vmem:[%s6917_s8 + $0x240] ss:$28 sps:$4 sm:$0xff]   ;;  %v5173_v48 = vld [vmem:[%s6917_s8 + $0x408] ss:$28 sps:$4 sm:$0xff]  }
 0x41b   : > { %v5176_v49 = vld [vmem:[%s6917_s8 + $0x27c] ss:$28 sps:$4 sm:$0xff]  }
 0x41d   : > { %3626 = vmatpush1.bf16.msra.mxu0 %v5104_v50  ;;  %3708 = vmatpush1.bf16.msra.mxu1 %v5107_v51  ;;  %v5174_v50 = vld [vmem:[%s6917_s8 + $0x278] ss:$28 sps:$4 sm:$0xff]   ;;  %v5177_v51 = vld [vmem:[%s6917_s8 + $0x440] ss:$28 sps:$4 sm:$0xff]  }
 0x41e   : > { %3627 = vmatprep.subr.bf16.mxu0 %v5112_v53  ;;  %3709 = vmatprep.subr.bf16.mxu1 %v5115_v56  ;;  %v5178_v53 = vld [vmem:[%s6917_s8 + $0x2b0] ss:$28 sps:$4 sm:$0xff]   ;;  %v5181_v56 = vld [vmem:[%s6917_s8 + $0x478] ss:$28 sps:$4 sm:$0xff]  }
 0x421   : > { %3628 = vmatpush1.bf16.msra.mxu0 %v5110_v58  ;;  %3710 = vmatpush1.bf16.msra.mxu1 %v5113_v59  ;;  %v5184_v58 = vld [vmem:[%s6917_s8 + $0x2ec] ss:$28 sps:$4 sm:$0xff]  }
 0x422   : > { %3629 = vmatprep.subr.bf16.mxu0 %v5118_v61  ;;  %3711 = vmatprep.subr.bf16.mxu1 %v5121_v62  ;;  %v5182_v59 = vld [vmem:[%s6917_s8 + $0x2e8] ss:$28 sps:$4 sm:$0xff]   ;;  %v5186_v62 = vld [vmem:[%s6917_s8 + $0x320] ss:$28 sps:$4 sm:$0xff]  }
 0x423   : > { %v5188_v61 = vld [vmem:[%s6917_s8 + $0x324] ss:$28 sps:$4 sm:$0xff]  }
 0x425   : > { %3630 = vmatpush1.bf16.msra.mxu0 %v5116_v63  ;;  %3712 = vmatpush1.bf16.msra.mxu1 %v5119_v0  ;;  %v5189_v63 = vld [vmem:[%s6917_s8 + $0x4e8] ss:$28 sps:$4 sm:$0xff]   ;;  %v5192_v0 = vld [vmem:[%s6917_s8 + $0x35c] ss:$28 sps:$4 sm:$0xff]  }
 0x426   : > { %3736 = vmatprep.subr.bf16.mxu0 %v5124_v3  ;;  %4528 = vmatprep.subr.bf16.mxu1 %v5125_v4  ;;  %v5193_v3 = vld [vmem:[%s6917_s8 + $0x520] ss:$28 sps:$4 sm:$0xff]   ;;  %v5196_v4 = vld [vmem:[%s6917_s8 + $0x394] ss:$28 sps:$4 sm:$0xff]  }
 0x428   : > { %3646 = vmatmul.mubr.bf16.vlgmr.msra.gmra.mrb[8].mxu0 %v6561_v6  ;;  %3728 = vmatmul.mubr.bf16.vlgmr.msra.gmra.mrb[20].mxu1 %v6561_v6 }
 0x429   : > { %3737 = vmatpush1.bf16.msra.mxu0 %v5122_v5  ;;  %3768 = vmatprep.mubr.bf16.mxu0 %v6429_v17  ;;  %v5194_v5 = vld [vmem:[%s6917_s8 + $0x390] ss:$28 sps:$4 sm:$0xff]  }
 0x42a   : > { %4529 = vmatpush3.bf16.msra.mxu1 %v5126_v7  ;;  %3850 = vmatprep.mubr.bf16.mxu1 %v6429_v17  ;;  %v5136_v17 = vld [vmem:[%s6917_s8 + $0x88] ss:$28 sps:$4 sm:$0xff]   ;;  %v5197_v7 = vld [vmem:[%s6917_s8 + $0x558] ss:$28 sps:$4 sm:$0xff]  }
 0x42b   : > { %3738 = vmatprep.subr.bf16.mxu0 %v5129_v8  ;;  %4530 = vmatprep.subr.bf16.mxu1 %v5130_v11  ;;  %v5200_v8 = vld [vmem:[%s6917_s8 + $0x3cc] ss:$28 sps:$4 sm:$0xff]  }
 0x42c   : > { %v5198_v11 = vld [vmem:[%s6917_s8 + $0x3c8] ss:$28 sps:$4 sm:$0xff]  }
 0x42d   : > { %3739 = vmatpush1.bf16.msra.mxu0 %v5127_v13  ;;  %v5203_v13 = vld [vmem:[%s6917_s8 + $0x404] ss:$28 sps:$4 sm:$0xff]  }
 0x42e   : > { %4531 = vmatpush3.bf16.msra.mxu1 %v5131_v14  ;;  %3740 = vmatprep.subr.bf16.mxu0 %v5134_v15  ;;  %v5209_v14 = vld [vmem:[%s6917_s8 + $0x474] ss:$28 sps:$4 sm:$0xff]  }
 0x42f   : > { %4532 = vmatprep.subr.bf16.mxu1 %v5135_v16  ;;  %v5207_v15 = vld [vmem:[%s6917_s8 + $0x470] ss:$28 sps:$4 sm:$0xff]  }
 0x430   : > { %v5212_v16 = vld [vmem:[%s6917_s8 + $0x4ac] ss:$28 sps:$4 sm:$0xff]  }
 0x431   : > { %3741 = vmatpush1.bf16.msra.mxu0 %v5132_v18  ;;  %v5210_v18 = vld [vmem:[%s6917_s8 + $0x4a8] ss:$28 sps:$4 sm:$0xff]  }
 0x432   : > { %4533 = vmatpush3.bf16.msra.mxu1 %v5136_v17  ;;  %3742 = vmatprep.subr.bf16.mxu0 %v5139_v19  ;;  %v5215_v17 = vld [vmem:[%s6917_s8 + $0x4e4] ss:$28 sps:$4 sm:$0xff]  }
 0x433   : > { %4534 = vmatprep.subr.bf16.mxu1 %v5140_v20  ;;  %v5213_v19 = vld [vmem:[%s6917_s8 + $0x4e0] ss:$28 sps:$4 sm:$0xff]  }
 0x434   : > { %v5218_v20 = vld [vmem:[%s6917_s8 + $0x51c] ss:$28 sps:$4 sm:$0xff]  }
 0x435   : > { %3743 = vmatpush1.bf16.msra.mxu0 %v5137_v22  ;;  %v5216_v22 = vld [vmem:[%s6917_s8 + $0x518] ss:$28 sps:$4 sm:$0xff]  }
 0x436   : > { %4535 = vmatpush3.bf16.msra.mxu1 %v5141_v23  ;;  %3744 = vmatprep.subr.bf16.mxu0 %v5144_v24  ;;  %v5221_v23 = vld [vmem:[%s6917_s8 + $0x554] ss:$28 sps:$4 sm:$0xff]  }
 0x437   : > { %4536 = vmatprep.subr.bf16.mxu1 %v5145_v25  ;;  %v5219_v24 = vld [vmem:[%s6917_s8 + $0x550] ss:$28 sps:$4 sm:$0xff]   ;;  %v6803_v25 = vld [vmem:[%s6918_s9] sm:$0x7f] }
 0x439   : > { %3745 = vmatpush1.bf16.msra.mxu0 %v5142_v26  ;;  %v2637_v26 = vrot.slane %v6803_v25, %v6160_v55 }
 0x43a   : > { %4537 = vmatpush3.bf16.msra.mxu1 %v5146_v27  ;;  %3746 = vmatprep.subr.bf16.mxu0 %v5149_v28  ;;  %v2645_v27 = vrot.slane %v6803_v25, %v6171_v9  ;;  %v2641_v28 = vrot.slane %v6803_v25, %v6166_v57 }
 0x43b   : > { %4538 = vmatprep.subr.bf16.mxu1 %v5150_v29  ;;  %v2649_v29 = vrot.slane %v6803_v25, %v6174_v10 }
 0x43d   : > { %3747 = vmatpush1.bf16.msra.mxu0 %v5147_v30 }
 0x43e   : > { %4539 = vmatpush3.bf16.msra.mxu1 %v5151_v31  ;;  %3748 = vmatprep.subr.bf16.mxu0 %v5154_v32 }
 0x43f   : > { %4540 = vmatprep.subr.bf16.mxu1 %v5155_v33 }
 0x441   : > { %3749 = vmatpush1.bf16.msra.mxu0 %v5152_v35 }
 0x442   : > { %4541 = vmatpush3.bf16.msra.mxu1 %v5156_v36  ;;  %3750 = vmatprep.subr.bf16.mxu0 %v5159_v37 }
 0x443   : > { %4542 = vmatprep.subr.bf16.mxu1 %v5160_v38 }
 0x445   : > { %3751 = vmatpush1.bf16.msra.mxu0 %v5157_v39 }
 0x446   : > { %4543 = vmatpush3.bf16.msra.mxu1 %v5161_v40  ;;  %3752 = vmatprep.subr.bf16.mxu0 %v5164_v41 }
 0x447   : > { %3858 = vmatprep.subr.bf16.mxu1 %v5348_v2 }
 0x449   : > { %3851 = vmatmul.mubr.bf16.vlgmr.msra.gmra.mrb[24].mxu1 %v6439_v21  ;;  %3753 = vmatpush1.bf16.msra.mxu0 %v5162_v42 }
 0x44a   : > { %3859 = vmatpush1.bf16.msra.mxu1 %v5165_v43  ;;  %4500 = vmatprep.mubr.msk.bf16.mxu1 %vm1627_vm0, %v6465_v34 }
 0x44b   : > { %3754 = vmatprep.subr.bf16.mxu0 %v5168_v12  ;;  %3860 = vmatprep.subr.bf16.mxu1 %v5348_v2 }
 0x44d   : > { %3755 = vmatpush1.bf16.msra.mxu0 %v5166_v44 }
 0x44e   : > { %3861 = vmatpush1.bf16.msra.mxu1 %v5169_v45  ;;  %3756 = vmatprep.subr.bf16.mxu0 %v5172_v46 }
 0x44f   : > { %3862 = vmatprep.subr.bf16.mxu1 %v5348_v2 }
 0x451   : > { %3757 = vmatpush1.bf16.msra.mxu0 %v5170_v47 }
 0x452   : > { %3863 = vmatpush1.bf16.msra.mxu1 %v5173_v48  ;;  %3758 = vmatprep.subr.bf16.mxu0 %v5176_v49 }
 0x453   : > { %3864 = vmatprep.subr.bf16.mxu1 %v5348_v2 }
 0x455   : > { %3759 = vmatpush1.bf16.msra.mxu0 %v5174_v50 }
 0x456   : > { %3865 = vmatpush1.bf16.msra.mxu1 %v5177_v51  ;;  %3760 = vmatprep.subr.bf16.mxu0 %v5180_v52 }
 0x457   : > { %3866 = vmatprep.subr.bf16.mxu1 %v5348_v2 }
 0x459   : > { %3761 = vmatpush1.bf16.msra.mxu0 %v5178_v53 }
 0x45a   : > { %3867 = vmatpush1.bf16.msra.mxu1 %v5181_v56  ;;  %3762 = vmatprep.subr.bf16.mxu0 %v5184_v58 }
 0x45b   : > { %3868 = vmatprep.subr.bf16.mxu1 %v5348_v2 }
 0x45d   : > { %3763 = vmatpush1.bf16.msra.mxu0 %v5182_v59 }
 0x45e   : > { %3869 = vmatpush1.bf16.msra.mxu1 %v5185_v60  ;;  %3764 = vmatprep.subr.bf16.mxu0 %v5188_v61 }
 0x45f   : > { %3870 = vmatprep.subr.bf16.mxu1 %v5348_v2 }
 0x461   : > { %3765 = vmatpush1.bf16.msra.mxu0 %v5186_v62 }
 0x462   : > { %3871 = vmatpush1.bf16.msra.mxu1 %v5189_v63  ;;  %3766 = vmatprep.subr.bf16.mxu0 %v5192_v0 }
 0x463   : > { %3872 = vmatprep.subr.bf16.mxu1 %v5348_v2 }
 0x465   : > { %3767 = vmatpush1.bf16.msra.mxu0 %v5190_v1 }
 0x466   : > { %3873 = vmatpush1.bf16.msra.mxu1 %v5193_v3  ;;  %3777 = vmatprep.subr.bf16.mxu0 %v5196_v4 }
 0x467   : > { %3874 = vmatprep.subr.bf16.mxu1 %v5348_v2  ;;  %v5201_v2 = vld [vmem:[%s6917_s8 + $0x400] ss:$28 sps:$4 sm:$0xff]  }
 0x468   : > { %3769 = vmatmul.mubr.bf16.vlgmr.msra.gmra.mrb[12].mxu0 %v6439_v21  ;;  %v5206_v21 = vld [vmem:[%s6917_s8 + $0x43c] ss:$28 sps:$4 sm:$0xff]  }
 0x469   : > { %3778 = vmatpush1.bf16.msra.mxu0 %v5194_v5  ;;  %4499 = vmatprep.mubr.msk.bf16.mxu0 %vm1627_vm0, %v6465_v34  ;;  %v5204_v34 = vld [vmem:[%s6917_s8 + $0x438] ss:$28 sps:$4 sm:$0xff]  }
 0x46a   : > { %3875 = vmatpush1.bf16.msra.mxu1 %v5197_v7  ;;  %3779 = vmatprep.subr.bf16.mxu0 %v5200_v8 }
 0x46d   : > { %3891 = vmatmul.mubr.bf16.vlgmr.msra.gmra.mrb[28].mxu1 %v6561_v6  ;;  %3780 = vmatpush1.bf16.msra.mxu0 %v5198_v11 }
 0x46e   : > { %3781 = vmatprep.subr.bf16.mxu0 %v5203_v13 }
 0x471   : > { %3782 = vmatpush1.bf16.msra.mxu0 %v5201_v2 }
 0x472   : > { %3783 = vmatprep.subr.bf16.mxu0 %v5206_v21 }
 0x475   : > { %3784 = vmatpush1.bf16.msra.mxu0 %v5204_v34 }
 0x476   : > { %3785 = vmatprep.subr.bf16.mxu0 %v5209_v14 }
 0x479   : > { %3786 = vmatpush1.bf16.msra.mxu0 %v5207_v15 }
 0x47a   : > { %3787 = vmatprep.subr.bf16.mxu0 %v5212_v16 }
 0x47d   : > { %3788 = vmatpush1.bf16.msra.mxu0 %v5210_v18 }
 0x47e   : > { %3789 = vmatprep.subr.bf16.mxu0 %v5215_v17 }
 0x481   : > { %3790 = vmatpush1.bf16.msra.mxu0 %v5213_v19 }
 0x482   : > { %3791 = vmatprep.subr.bf16.mxu0 %v5218_v20 }
 0x485   : > { %3792 = vmatpush1.bf16.msra.mxu0 %v5216_v22 }
 0x486   : > { %3793 = vmatprep.subr.bf16.mxu0 %v5221_v23 }
 0x489   : > { %3794 = vmatpush1.bf16.msra.mxu0 %v5219_v24 }
 0x48c   : > { %3810 = vmatmul.mubr.bf16.vlgmr.msra.gmra.mrb[12].mxu0 %v6561_v6 }
 0x4fb   : > { %v3647_v30 = vpop.f32.mrb[8].mxu0  ;;  %v3729_v31 = vpop.f32.mrb[20].mxu1 }
 0x4fc   : > { %v4556_v6 = vadd.f32 %v3647_v30, %v2637_v26  ;;  %v4558_v32 = vadd.f32 %v3729_v31, %v2645_v27  ;;  %v3649_v33 = vpop.f32.mrb[9].mxu0  ;;  %v3731_v35 = vpop.f32.mrb[21].mxu1 }
 0x4fd   : > { %v4557_v36 = vadd.f32 %v3649_v33, %v2641_v28  ;;  %v4559_v37 = vadd.f32 %v3731_v35, %v2649_v29  ;;  %v3651_v55 = vpop.f32.mrb[10].mxu0  ;;  %v3733_v38 = vpop.f32.mrb[22].mxu1 }
 0x4fe   : > { %v3898_v39 = vsub.f32 0.0, %v4556_v6  ;;  %v3900_v9 = vsub.f32 0.0, %v4558_v32  ;;  %v3652_v40 = vpop.f32.mrb[11].mxu0  ;;  %v3734_v57 = vpop.f32.mrb[23].mxu1 }
 0x4ff   : > { %v3899_v41 = vsub.f32 0.0, %v4557_v36  ;;  %v3901_v10 = vsub.f32 0.0, %v4559_v37 }
 0x500   : > { %v3905_v42 = vmul.f32 1.442695, %v3898_v39  ;;  %v3909_v43 = vmul.f32 1.442695, %v3900_v9 }
 0x501   : > { %v3907_v12 = vmul.f32 1.442695, %v3899_v41  ;;  %v3911_v44 = vmul.f32 1.442695, %v3901_v10 }
 0x502   : > { %5224 = vpow2.f32 %v3905_v42 }
 0x503   : > { %5226 = vpow2.f32 %v3909_v43 }
 0x504   : > { %5228 = vpow2.f32 %v3907_v12 }
 0x505   : > { %5265 = shalt.err (!%p5262_p3)
}
 0x506   : > { %s5266_s22 = scalar_lea.hbm %s6818_s0, 128  ;;  %s5270_s12 = scalar_lea.hbm %s6920_s11, 384 }
 0x507   : > { %p5267_p4 = scmp.ne.s32.totalorder %s6818_s0, %s5266_s22  ;;  %p5271_p9 = scmp.lt.u32.totalorder %s6818_s0, %s6920_s11 }
 0x508   : > { %p5272_p10 = scmp.lt.u32.totalorder %s5270_s12, %s5266_s22  ;;  %p5274_p12 = scmp.lt.u32.totalorder %s5266_s22, %s6818_s0 }
 0x509   : > { %p5268_p7 = pnand %p5267_p4, %p5450_p5 }
 0x50a   : > { %p5273_p11 = por %p5272_p10, %p5271_p9 }
 0x50b   : > { %p5269_p8 = pneg %p5268_p7 }
 0x50c   : > { %p5275_p13 = por %p5274_p12, %p5273_p11 }
 0x50e   : > { %p5276_p0 = pnand %p5275_p13, %p5269_p8 }
 0x510   : > { %5279 = shalt.err (!%p5276_p0)
}
 0x511   : > { %4598 = dma.vmem_to_hbm [thread:$0]  (%p5450_p5), %s6820_s25, 128, %s6818_s0, %s3948_s15   ;;  %5230 = vpow2.f32 %v3911_v44  ;;  %v5225_v45 = vpop.eup %5224  ;;  %v2660_v1 = vsub.s32 6, %v6157_v54  ;;  %v2652_v15 = vsub.s32 4, %v6157_v54  ;;  %v2656_v16 = vsub.s32 5, %v6157_v54 }
 0x512   : > { %v5227_v46 = vpop.eup %5226  ;;  %v3919_v47 = vadd.f32 1.0, %v5225_v45  ;;  %s4594_s19 = smul.u32 56, %s6187_s26  ;;  %s3943_s24 = scalar_lea.sflag [#allocation3], %s6187_s26 }
 0x513   : > { %v5229_v48 = vpop.eup %5228  ;;  %v3921_v49 = vadd.f32 1.0, %v5227_v46  ;;  %v2661_v3 = vrot.slane %v6803_v25, %v2660_v1  ;;  %v2653_v18 = vrot.slane %v6803_v25, %v2652_v15  ;;  %v2657_v17 = vrot.slane %v6803_v25, %v2656_v16  ;;  %s4596_s25 = smul.u32 896, %s5433_s21  ;;  %s5351_s21 = smov [#allocation2]  }
 0x514   : > { %5232 = vrcp.f32 %v3919_v47  ;;  %v3920_v51 = vadd.f32 1.0, %v5229_v48  ;;  %s6845_s29 = scalar_lea.vmem [#allocation2], %s4594_s19  ;;  %s5284_s12 = sshll.u32 %s5351_s21, 4  ;;  %s5285_s12 = int_to_ptr.vmem [resolvable:$false] %s5284_s12 }
 0x515   : > { %5234 = vrcp.f32 %v3921_v49  ;;  %s3962_s0 = sshll.u32 %s6845_s29, 4  ;;  %s6864_s22 = scalar_lea.hbm %s6919_s10, %s4596_s25  ;;  %s6866_s0 = int_to_ptr.vmem [resolvable:$true] %s3962_s0 }
 0x516   : > { %5236 = vrcp.f32 %v3920_v51  ;;  %s5280_s30 = scalar_lea.vmem %s6866_s0, 896  ;;  %s5286_s14 = scalar_lea.vmem %s5285_s12, 1792 }
 0x517   : > { %p5281_p1 = scmp.ne.s32.totalorder %s6866_s0, %s5280_s30  ;;  %p5287_p4 = scmp.lt.s32.totalorder %s6866_s0, %s5285_s12 }
 0x518   : > { %p5288_p7 = scmp.lt.s32.totalorder %s5286_s14, %s5280_s30 }
 0x519   : > { %p5282_p2 = pnand %p5281_p1, %p5450_p5 }
 0x51a   : > { %p5289_p8 = por %p5288_p7, %p5287_p4 }
 0x51b   : > { %v5231_v50 = vpop.eup %5230  ;;  %p5283_p3 = pneg %p5282_p2 }
 0x51c   : > { %v3922_v52 = vadd.f32 1.0, %v5231_v50  ;;  %v4544_v60 = vpop.f32.mrb[24].mxu1 }
 0x51d   : > { %v4545_v61 = vpop.f32.mrb[25].mxu1  ;;  %p5290_p9 = pnand %p5289_p8, %p5283_p3 }
 0x51e   : > { %5238 = vrcp.f32 %v3922_v52  ;;  %v5233_v53 = vpop.eup %5232  ;;  %v4546_v62 = vadd.f32 %v4545_v61, %v4544_v60  ;;  %v4547_v63 = vpop.f32.mrb[26].mxu1 }
 0x51f   : > { %v5235_v56 = vpop.eup %5234  ;;  %3933 = vst [vmem:[%s6845_s29] sm:$0xff] %v5233_v53  ;;  %v4548_v0 = vpop.f32.mrb[27].mxu1 }
 0x520   : > { %v5237_v58 = vpop.eup %5236  ;;  %3935 = vst [vmem:[%s6845_s29 + $0x10] sm:$0xff] %v5235_v56  ;;  %v3853_v4 = vadd.f32 %v4546_v62, %v2661_v3 }
 0x521   : > { %3934 = vst [vmem:[%s6845_s29 + $0x8] sm:$0xff] %v5237_v58 }
 0x528   : > { %v5239_v59 = vpop.eup %5238 }
 0x529   : > { %3936 = vst [vmem:[%s6845_s29 + $0x18] sm:$0xff] %v5239_v59 }
 0x540   : > { %v3892_v5 = vpop.f32.mrb[28].mxu1 }
 0x541   : > { %v3893_v7 = vadd.f32 %v3892_v5, %v3853_v4  ;;  %v3894_v8 = vpop.f32.mrb[29].mxu1 }
 0x542   : > { %v3895_v11 = vpop.f32.mrb[30].mxu1 }
 0x543   : > { %v3904_v13 = vsub.f32 0.0, %v3893_v7  ;;  %v3896_v2 = vpop.f32.mrb[31].mxu1 }
 0x545   : > { %v3917_v21 = vmul.f32 1.442695, %v3904_v13 }
 0x547   : > { %5240 = vpow2.f32 %v3917_v21 }
 0x551   : > { %v5241_v34 = vpop.eup %5240 }
 0x552   : > { %v3925_v14 = vadd.f32 1.0, %v5241_v34 }
 0x554   : > { %5242 = vrcp.f32 %v3925_v14 }
 0x55e   : > { %v5243_v19 = vpop.eup %5242 }
 0x55f   : > { %3939 = vst.msk [vmem:[%s6845_s29 + $0x30] sm:$0xff] %vm1627_vm0, %v5243_v19  ;;  %v3811_v20 = vpop.f32.mrb[12].mxu0 }
 0x560   : > { %v4560_v22 = vadd.f32 %v3811_v20, %v2653_v18  ;;  %v3813_v23 = vpop.f32.mrb[13].mxu0 }
 0x561   : > { %v4561_v24 = vadd.f32 %v3813_v23, %v2657_v17  ;;  %v3815_v26 = vpop.f32.mrb[14].mxu0 }
 0x562   : > { %v3902_v27 = vsub.f32 0.0, %v4560_v22  ;;  %v3816_v28 = vpop.f32.mrb[15].mxu0 }
 0x563   : > { %v3903_v29 = vsub.f32 0.0, %v4561_v24 }
 0x564   : > { %v3913_v30 = vmul.f32 1.442695, %v3902_v27 }
 0x565   : > { %v3915_v54 = vmul.f32 1.442695, %v3903_v29 }
 0x566   : > { %5244 = vpow2.f32 %v3913_v30 }
 0x567   : > { %5246 = vpow2.f32 %v3915_v54 }
 0x570   : > { %v5245_v25 = vpop.eup %5244 }
 0x571   : > { %v5247_v31 = vpop.eup %5246  ;;  %v3923_v6 = vadd.f32 1.0, %v5245_v25 }
 0x572   : > { %v3924_v32 = vadd.f32 1.0, %v5247_v31 }
 0x573   : > { %5248 = vrcp.f32 %v3923_v6 }
 0x574   : > { %5250 = vrcp.f32 %v3924_v32 }
 0x57d   : > { %v5249_v33 = vpop.eup %5248 }
 0x57e   : > { %v5251_v35 = vpop.eup %5250  ;;  %3937 = vst [vmem:[%s6845_s29 + $0x20] sm:$0xff] %v5249_v33 }
 0x57f   : > { %3938 = vst [vmem:[%s6845_s29 + $0x28] sm:$0xff] %v5251_v35 }
 0x580   : > { %5293 = shalt.err (!%p5290_p9)
}
 0x581   : > { %s5294_s26 = scalar_lea.hbm %s6864_s22, 896  ;;  %s5298_s29 = scalar_lea.hbm %s6919_s10, 2688 }
 0x582   : > { %p5295_p10 = scmp.ne.s32.totalorder %s6864_s22, %s5294_s26  ;;  %p5299_p13 = scmp.lt.u32.totalorder %s6864_s22, %s6919_s10 }
 0x583   : > { %p5300_p0 = scmp.lt.u32.totalorder %s5298_s29, %s5294_s26  ;;  %p5302_p2 = scmp.lt.u32.totalorder %s5294_s26, %s6864_s22 }
 0x584   : > { %p5296_p11 = pnand %p5295_p10, %p5450_p5 }
 0x585   : > { %p5301_p1 = por %p5300_p0, %p5299_p13 }
 0x586   : > { %p5297_p12 = pneg %p5296_p11 }
 0x587   : > { %p5303_p3 = por %p5302_p2, %p5301_p1 }
 0x589   : > { %p5304_p4 = pnand %p5303_p3, %p5297_p12 }
 0x58b   : > { %5307 = shalt.err (!%p5304_p4)
}
 0x58c   : > { %4597 = dma.vmem_to_hbm [thread:$0]  (%p5450_p5), %s6866_s0, 896, %s6864_s22, %s3943_s24  }
 0x58d PF: > { %p4608_p7 = scmp.ge.s32.totalorder %s5346_s20, 2  ;;  %s3987_s16 = sand.u32 1, %s5334_s17  }
 0x58e   : > { %s3988_s30 = scalar_lea.sflag [#allocation3], %s3987_s16 }
 0x58f   : > { %p4602_p8 = pnand %p4608_p7, %p5454_p6 }
 0x591   : > { %5325 = dma.done.wait (!%p4602_p8), %s3988_s30, 896  }
 0x592   : > { %5327 = vsyncadd (!%p4602_p8), %s3988_s30, 4294966400  ;;  %s3997_s21 = scalar_lea.sflag [#allocation5], %s3987_s16 }
 0x593   : > { %5329 = dma.done.wait (!%p4602_p8), %s3997_s21, 128  }
 0x594   : > { %5331 = vsyncadd (!%p4602_p8), %s3997_s21, 4294967168  ;;  %s6928_s27 = sld [smem:[#allocation8_spill]]  ;;  %s6929_s19 = sld [smem:[#allocation9_spill]] }
 0x595   : > { %p25_p5 = scmp.ge.s32.totalorder %s5437_s23, 5   ;;  %s6930_s17 = smov %s5338_s18 }
 0x596   : > { %s6932_s20 = smov %s5437_s23 }
 0x597   :  { %27 = sbr.rel (!%p25_p5) target bundleno = 7 (0x7), region = 115 }
 0x59a   : > { %s6931_s18 = smov %s6928_s27 }
 0x59e   :  { %4002 = vsyncpa [#allocation3], 1 }
 0x59f   :  { %4004 = vsyncpa [#allocation3 + $0x1], 1 }
 0x5a0   :  { %4005 = vsyncpa [#allocation5], 1 }
 0x5a1   :  { %4007 = vsyncpa [#allocation5 + $0x1], 1 }

</bundles_post_ra>
